<compile_context>
chip_gen: v6e
topology: v6e:2x2x1
jax: 0.10.0
libtpu: 0.0.40
codegen_flags: <defaults>
</compile_context>

<pallas_src>
import jax
import jax.numpy as jnp
from jax import lax
from jax.experimental import pallas as pl
from jax.experimental.pallas import tpu as pltpu

NEGATIVE_SLOPE = 0.2


def _leaky_relu(x, ns=NEGATIVE_SLOPE):
    return jnp.where(x > 0, x, ns * x)


def vdisc_kernel(x_ref,
                 w0_ref, b0_ref,
                 w1_ref, b1_ref,
                 w2_ref, b2_ref,
                 wo_ref, bo_ref,
                 o_ref):
    """One (tb, F) bf16 batch tile: 3 bf16 MXU matmuls (f32 acc) + 1-row MXU out layer."""
    x = x_ref[...]                                   # (tb, F) bf16 streamed tile

    # layer 0: Linear + LeakyReLU   (do=0 in __init__, no dropout)
    h = jnp.dot(x, w0_ref[...], preferred_element_type=jnp.float32) + b0_ref[...]
    h = _leaky_relu(h)

    # layer 1: Linear + LeakyReLU (+ Dropout -> identity in eval mode)
    h = jnp.dot(h.astype(jnp.bfloat16), w1_ref[...],
                preferred_element_type=jnp.float32) + b1_ref[...]
    h = _leaky_relu(h)

    # layer 2: Linear + LeakyReLU (+ Dropout -> identity in eval mode)
    h = jnp.dot(h.astype(jnp.bfloat16), w2_ref[...],
                preferred_element_type=jnp.float32) + b2_ref[...]
    h = _leaky_relu(h)

    # out layer: Linear(H2, 1) as a single M=1 MXU pass, result already lane-dense
    # (1, tb) — avoids the previous XLU cross-lane reduce + relayout per grid step.
    logits = lax.dot_general(wo_ref[...], h, (((1,), (1,)), ((), ())),
                             preferred_element_type=jnp.float32) + bo_ref[...]

    # Exact sigmoid: exp + exact reciprocal both land on the EUP slot (free here).
    o_ref[...] = pl.reciprocal(1.0 + jnp.exp(-logits), approx=False).astype(o_ref.dtype)


def _vmem_budget_bytes():
    """Generation-aware scoped-VMEM budget (v5e/v6e: 128 MiB physical, v7x: 64 MiB)."""
    try:
        vmem = int(pltpu.get_tpu_info().vmem_capacity_bytes)
    except Exception:
        vmem = 64 << 20                       # conservative: v7x per-TC size
    # Leave headroom for compiler-internal scratch; cap so v7x never over-commits.
    return max(16 << 20, min((vmem * 3) // 4, 48 << 20))


def _pick_batch_tile(B, F, x_itemsize, resident_bytes, max_hidden, vmem_budget):
    """Largest 128-multiple batch tile that (a) gives >= 4 grid steps (>= 2 per TC on a
    v7x megacore split), falling back to >= 2, and (b) fits the VMEM budget."""
    def fits(tb):
        x_bytes = 3 * tb * F * x_itemsize        # pipelined x tiles (2 bufs + margin)
        act_bytes = 4 * tb * max_hidden * 4      # live f32 activations
        out_bytes = 2 * tb * 4                   # double-buffered (1, tb) output
        return resident_bytes + x_bytes + act_bytes + out_bytes <= vmem_budget

    for min_steps in (4, 2):
        for tb in (1024, 512, 256, 128):
            if B % tb == 0 and B // tb >= min_steps and fits(tb):
                return tb
    # Tiny-batch fallback: still try to split into >= 2 sublane-aligned steps so a
    # v7x megacore does not idle one TensorCore; otherwise a single tile.
    for tb in range(B // 2, 0, -1):
        if B % tb == 0 and tb % 8 == 0:
            return tb
    return B


def vdiscriminator_forward(x, params, *, batch_tile=None):
    """x: (B, F_pad) bfloat16 (pad/cast at the producer).  params: dict of weights."""
    B, F = x.shape
    if x.dtype != jnp.bfloat16:
        # Prefer casting at the producer; this is a safety net only.
        x = x.astype(jnp.bfloat16)

    w0, b0 = params["w0"], params["b0"]   # (F, H0) bf16, (1, H0) f32
    w1, b1 = params["w1"], params["b1"]   # (H0, H1) bf16, (1, H1) f32
    w2, b2 = params["w2"], params["b2"]   # (H1, H2) bf16, (1, H2) f32
    wo, bo = params["wo"], params["bo"]   # (1, H2) f32,  (1, 1) f32
    weights = (w0, b0, w1, b1, w2, b2, wo, bo)
    assert w0.shape[0] == F, (w0.shape, F)

    # Weights/biases use constant index_maps -> DMA'd once, held resident in VMEM.
    # Factor 2 accounts for the pipeline's default double-buffered allocation.
    resident_bytes = 2 * sum(int(a.size) * a.dtype.itemsize for a in weights)
    max_hidden = max(w0.shape[1], w1.shape[1], w2.shape[1])
    vmem_budget = _vmem_budget_bytes()
    tb = (_pick_batch_tile(B, F, x.dtype.itemsize, resident_bytes, max_hidden,
                           vmem_budget)
          if batch_tile is None else batch_tile)
    assert B % tb == 0, (B, tb)

    def full(arr):
        # Constant block index -> operand stays resident, no per-step re-DMA.
        return pl.BlockSpec(arr.shape, lambda i: (0, 0))

    grid_spec = pltpu.PrefetchScalarGridSpec(
        num_scalar_prefetch=0,
        grid=(B // tb,),
        in_specs=[pl.BlockSpec((tb, F), lambda i: (i, 0))] + [full(a) for a in weights],
        # Lane-dense output: (1, B) row, block (1, tb) -> unmasked full vector stores.
        out_specs=pl.BlockSpec((1, tb), lambda i: (0, i)),
    )

    out = pl.pallas_call(
        vdisc_kernel,
        out_shape=jax.ShapeDtypeStruct((1, B), jnp.float32),
        grid_spec=grid_spec,
        compiler_params=pltpu.CompilerParams(
            dimension_semantics=("parallel",),          # grid steps shard across TCs
            vmem_limit_bytes=int(vmem_budget)),
    )(x, *weights)

    return out.reshape(B, 1)


def init_params(key, in_features, layers, lane_multiple=128):
    """nn.Linear-style uniform(-1/sqrt(fan_in), 1/sqrt(fan_in)) init.
    Hidden weights stored transposed (fan_in, fan_out) in bf16 (MXU fast path);
    w0 rows are zero-padded so fan_in is a 128-lane multiple.  Biases, the out-layer
    weight row and out bias stay f32.  Returns (params, padded_in_features)."""
    h0, h1, h2 = layers[0], layers[1], layers[2]
    F_pad = ((in_features + lane_multiple - 1) // lane_multiple) * lane_multiple
    params = {}

    def lin(k, fi, fo, name, w_dtype, pad_rows=0):
        kw, kb = jax.random.split(k)
        bound = 1.0 / float(fi) ** 0.5
        w = jax.random.uniform(kw, (fi, fo), jnp.float32, -bound, bound)
        if pad_rows:
            w = jnp.concatenate([w, jnp.zeros((pad_rows, fo), jnp.float32)], axis=0)
        params[f"w{name}"] = w.astype(w_dtype)
        params[f"b{name}"] = jax.random.uniform(kb, (1, fo), jnp.float32, -bound, bound)

    key, k0, k1, k2, ko = jax.random.split(key, 5)
    lin(k0, in_features, h0, "0", jnp.bfloat16, pad_rows=F_pad - in_features)
    lin(k1, h0, h1, "1", jnp.bfloat16)
    lin(k2, h1, h2, "2", jnp.bfloat16)

    # out layer: Linear(h2, 1) weight kept as a (1, h2) f32 row.
    kw, kb = jax.random.split(ko)
    bound = 1.0 / float(h2) ** 0.5
    params["wo"] = jax.random.uniform(kw, (1, h2), jnp.float32, -bound, bound)
    params["bo"] = jax.random.uniform(kb, (1, 1), jnp.float32, -bound, bound)
    return params, F_pad


def reference_forward(x_bf16, params):
    """Pure-JAX reference matching the PyTorch forward (eval mode), same bf16/f32 mix."""
    def lin(h, w, b):
        return jnp.dot(h.astype(jnp.bfloat16), w, preferred_element_type=jnp.float32) + b

    h = _leaky_relu(lin(x_bf16, params["w0"], params["b0"]))
    h = _leaky_relu(lin(h, params["w1"], params["b1"]))
    h = _leaky_relu(lin(h, params["w2"], params["b2"]))
    logits = jnp.dot(h, params["wo"].T, preferred_element_type=jnp.float32) + params["bo"]
    return jax.nn.sigmoid(logits)


if __name__ == "__main__":
    # Module-default feature width (28*28), lane-aligned hidden widths, batch sized
    # so the tile picker lands on >= 4 grid steps (tb=128).
    B = 512
    in_features = 28 * 28           # 784 -> padded to 896
    layers = [128, 128, 128]        # n_layers = 2 => hidden dims 128 -> 128 -> 128

    key = jax.random.PRNGKey(0)
    kx, kp = jax.random.split(key)

    params, F_pad = init_params(kp, in_features, layers)

    x = jax.random.normal(kx, (B, in_features), jnp.float32)
    # Zero-pad features to the lane multiple and cast to bf16 at the producer:
    # the kernel streams x in bf16, halving the only HBM-bound stream.
    x_pad = jnp.zeros((B, F_pad), jnp.float32).at[:, :in_features].set(x)
    x_bf16 = x_pad.astype(jnp.bfloat16)

    out = vdiscriminator_forward(x_bf16, params)
    out = jax.block_until_ready(out)

    ref = reference_forward(x_bf16, params)
    assert out.shape == (B, 1)
    max_err = float(jnp.max(jnp.abs(out - ref)))
    # bf16 matmul operands (f32 accumulation), exact sigmoid => comfortably < 2e-3.
    assert bool(jnp.allclose(out, ref, atol=2e-3, rtol=2e-3)), max_err

    print("KERNEL_OK")
</pallas_src>

<mosaic_0001>
module attributes {stable_mosaic.version = 11 : i64} {
  func.func @vdisc_kernel(%arg0: i32, %arg1: memref<128x896xbf16, #tpu.memory_space<vmem>>, %arg2: memref<896x128xbf16, #tpu.memory_space<vmem>>, %arg3: memref<1x128xf32, #tpu.memory_space<vmem>>, %arg4: memref<128x128xbf16, #tpu.memory_space<vmem>>, %arg5: memref<1x128xf32, #tpu.memory_space<vmem>>, %arg6: memref<128x128xbf16, #tpu.memory_space<vmem>>, %arg7: memref<1x128xf32, #tpu.memory_space<vmem>>, %arg8: memref<1x128xf32, #tpu.memory_space<vmem>>, %arg9: memref<1x1xf32, #tpu.memory_space<vmem>>, %arg10: memref<1x128xf32, #tpu.memory_space<vmem>>) attributes {dimension_semantics = [#tpu.dimension_semantics<parallel>], iteration_bounds = array<i64: 4>, scalar_prefetch = 0 : i64, scratch_operands = 0 : i64, tpu.core_type = #tpu.core_type<tc>, window_params = [{transform_indices = @transform_0, window_bounds = array<i64: 128, 896>}, {pipeline_mode = #tpu.pipeline_mode<synchronous>, transform_indices = @transform_1, window_bounds = array<i64: 896, 128>}, {pipeline_mode = #tpu.pipeline_mode<synchronous>, transform_indices = @transform_2, window_bounds = array<i64: 1, 128>}, {pipeline_mode = #tpu.pipeline_mode<synchronous>, transform_indices = @transform_3, window_bounds = array<i64: 128, 128>}, {pipeline_mode = #tpu.pipeline_mode<synchronous>, transform_indices = @transform_4, window_bounds = array<i64: 1, 128>}, {pipeline_mode = #tpu.pipeline_mode<synchronous>, transform_indices = @transform_5, window_bounds = array<i64: 128, 128>}, {pipeline_mode = #tpu.pipeline_mode<synchronous>, transform_indices = @transform_6, window_bounds = array<i64: 1, 128>}, {pipeline_mode = #tpu.pipeline_mode<synchronous>, transform_indices = @transform_7, window_bounds = array<i64: 1, 128>}, {pipeline_mode = #tpu.pipeline_mode<synchronous>, transform_indices = @transform_8, window_bounds = array<i64: 1, 1>}, {transform_indices = @transform_9, window_bounds = array<i64: 1, 128>}]} {
    %c0 = arith.constant 0 : index
    %c0_0 = arith.constant 0 : index
    %0 = vector.load %arg1[%c0, %c0_0] : memref<128x896xbf16, #tpu.memory_space<vmem>>, vector<128x896xbf16>
    %c0_1 = arith.constant 0 : index
    %c0_2 = arith.constant 0 : index
    %1 = vector.load %arg2[%c0_1, %c0_2] : memref<896x128xbf16, #tpu.memory_space<vmem>>, vector<896x128xbf16>
    %cst = arith.constant dense<0.000000e+00> : vector<128x128xf32>
    %2 = tpu.matmul %0, %1, %cst {dimension_numbers = #tpu.dot_dimension_numbers<[1], [0], [0], [1], [0, 0, 1, 1], [], []>} : vector<128x896xbf16>, vector<896x128xbf16>, vector<128x128xf32> -> vector<128x128xf32>
    %c0_3 = arith.constant 0 : index
    %c0_4 = arith.constant 0 : index
    %3 = vector.load %arg3[%c0_3, %c0_4] : memref<1x128xf32, #tpu.memory_space<vmem>>, vector<1x128xf32>
    %4 = vector.broadcast %3 : vector<1x128xf32> to vector<128x128xf32>
    %5 = arith.addf %2, %4 : vector<128x128xf32>
    %cst_5 = arith.constant 0.000000e+00 : f32
    %6 = vector.broadcast %cst_5 : f32 to vector<128x128xf32>
    %7 = arith.cmpf ogt, %5, %6 : vector<128x128xf32>
    %cst_6 = arith.constant 2.000000e-01 : f32
    %8 = vector.broadcast %cst_6 : f32 to vector<128x128xf32>
    %9 = arith.mulf %8, %5 : vector<128x128xf32>
    %10 = arith.select %7, %5, %9 : vector<128x128xi1>, vector<128x128xf32>
    %11 = arith.truncf %10 : vector<128x128xf32> to vector<128x128xbf16>
    %c0_7 = arith.constant 0 : index
    %c0_8 = arith.constant 0 : index
    %12 = vector.load %arg4[%c0_7, %c0_8] : memref<128x128xbf16, #tpu.memory_space<vmem>>, vector<128x128xbf16>
    %cst_9 = arith.constant dense<0.000000e+00> : vector<128x128xf32>
    %13 = tpu.matmul %11, %12, %cst_9 {dimension_numbers = #tpu.dot_dimension_numbers<[1], [0], [0], [1], [0, 0, 1, 1], [], []>} : vector<128x128xbf16>, vector<128x128xbf16>, vector<128x128xf32> -> vector<128x128xf32>
    %c0_10 = arith.constant 0 : index
    %c0_11 = arith.constant 0 : index
    %14 = vector.load %arg5[%c0_10, %c0_11] : memref<1x128xf32, #tpu.memory_space<vmem>>, vector<1x128xf32>
    %15 = vector.broadcast %14 : vector<1x128xf32> to vector<128x128xf32>
    %16 = arith.addf %13, %15 : vector<128x128xf32>
    %cst_12 = arith.constant 0.000000e+00 : f32
    %17 = vector.broadcast %cst_12 : f32 to vector<128x128xf32>
    %18 = arith.cmpf ogt, %16, %17 : vector<128x128xf32>
    %cst_13 = arith.constant 2.000000e-01 : f32
    %19 = vector.broadcast %cst_13 : f32 to vector<128x128xf32>
    %20 = arith.mulf %19, %16 : vector<128x128xf32>
    %21 = arith.select %18, %16, %20 : vector<128x128xi1>, vector<128x128xf32>
    %22 = arith.truncf %21 : vector<128x128xf32> to vector<128x128xbf16>
    %c0_14 = arith.constant 0 : index
    %c0_15 = arith.constant 0 : index
    %23 = vector.load %arg6[%c0_14, %c0_15] : memref<128x128xbf16, #tpu.memory_space<vmem>>, vector<128x128xbf16>
    %cst_16 = arith.constant dense<0.000000e+00> : vector<128x128xf32>
    %24 = tpu.matmul %22, %23, %cst_16 {dimension_numbers = #tpu.dot_dimension_numbers<[1], [0], [0], [1], [0, 0, 1, 1], [], []>} : vector<128x128xbf16>, vector<128x128xbf16>, vector<128x128xf32> -> vector<128x128xf32>
    %c0_17 = arith.constant 0 : index
    %c0_18 = arith.constant 0 : index
    %25 = vector.load %arg7[%c0_17, %c0_18] : memref<1x128xf32, #tpu.memory_space<vmem>>, vector<1x128xf32>
    %26 = vector.broadcast %25 : vector<1x128xf32> to vector<128x128xf32>
    %27 = arith.addf %24, %26 : vector<128x128xf32>
    %cst_19 = arith.constant 0.000000e+00 : f32
    %28 = vector.broadcast %cst_19 : f32 to vector<128x128xf32>
    %29 = arith.cmpf ogt, %27, %28 : vector<128x128xf32>
    %cst_20 = arith.constant 2.000000e-01 : f32
    %30 = vector.broadcast %cst_20 : f32 to vector<128x128xf32>
    %31 = arith.mulf %30, %27 : vector<128x128xf32>
    %32 = arith.select %29, %27, %31 : vector<128x128xi1>, vector<128x128xf32>
    %c0_21 = arith.constant 0 : index
    %c0_22 = arith.constant 0 : index
    %33 = vector.load %arg8[%c0_21, %c0_22] : memref<1x128xf32, #tpu.memory_space<vmem>>, vector<1x128xf32>
    %cst_23 = arith.constant dense<0.000000e+00> : vector<1x128xf32>
    %34 = tpu.matmul %33, %32, %cst_23 {dimension_numbers = #tpu.dot_dimension_numbers<[1], [1], [0], [0], [0, 0, 1, 0], [], []>} : vector<1x128xf32>, vector<128x128xf32>, vector<1x128xf32> -> vector<1x128xf32>
    %c0_24 = arith.constant 0 : index
    %c0_25 = arith.constant 0 : index
    %35 = vector.load %arg9[%c0_24, %c0_25] : memref<1x1xf32, #tpu.memory_space<vmem>>, vector<1x1xf32>
    %36 = vector.broadcast %35 : vector<1x1xf32> to vector<1x128xf32>
    %37 = arith.addf %34, %36 : vector<1x128xf32>
    %cst_26 = arith.constant 0.000000e+00 : f32
    %38 = vector.broadcast %cst_26 : f32 to vector<1x128xf32>
    %39 = arith.subf %38, %37 : vector<1x128xf32>
    %40 = math.exp %39 : vector<1x128xf32>
    %cst_27 = arith.constant 1.000000e+00 : f32
    %41 = vector.broadcast %cst_27 : f32 to vector<1x128xf32>
    %42 = arith.addf %41, %40 : vector<1x128xf32>
    %43 = tpu.reciprocal %42 : vector<1x128xf32> -> vector<1x128xf32>
    %c0_28 = arith.constant 0 : index
    %c0_29 = arith.constant 0 : index
    %44 = vector.load %arg10[%c0_28, %c0_29] : memref<1x128xf32, #tpu.memory_space<vmem>>, vector<1x128xf32>
    tpu.vector_store %arg10[%c0_28, %c0_29], %43 {strides = array<i32>} : memref<1x128xf32, #tpu.memory_space<vmem>>, vector<1x128xf32>,
    return
  }
  func.func @transform_0(%arg0: i32) -> (i32, i32) {
    %c0_i32 = arith.constant 0 : i32
    %c0_i32_0 = arith.constant 0 : i32
    return %arg0, %c0_i32 : i32, i32
  }
  func.func @transform_1(%arg0: i32) -> (i32, i32) {
    %c0_i32 = arith.constant 0 : i32
    %c0_i32_0 = arith.constant 0 : i32
    %c0_i32_1 = arith.constant 0 : i32
    return %c0_i32, %c0_i32_0 : i32, i32
  }
  func.func @transform_2(%arg0: i32) -> (i32, i32) {
    %c0_i32 = arith.constant 0 : i32
    %c0_i32_0 = arith.constant 0 : i32
    %c0_i32_1 = arith.constant 0 : i32
    return %c0_i32, %c0_i32_0 : i32, i32
  }
  func.func @transform_3(%arg0: i32) -> (i32, i32) {
    %c0_i32 = arith.constant 0 : i32
    %c0_i32_0 = arith.constant 0 : i32
    %c0_i32_1 = arith.constant 0 : i32
    return %c0_i32, %c0_i32_0 : i32, i32
  }
  func.func @transform_4(%arg0: i32) -> (i32, i32) {
    %c0_i32 = arith.constant 0 : i32
    %c0_i32_0 = arith.constant 0 : i32
    %c0_i32_1 = arith.constant 0 : i32
    return %c0_i32, %c0_i32_0 : i32, i32
  }
  func.func @transform_5(%arg0: i32) -> (i32, i32) {
    %c0_i32 = arith.constant 0 : i32
    %c0_i32_0 = arith.constant 0 : i32
    %c0_i32_1 = arith.constant 0 : i32
    return %c0_i32, %c0_i32_0 : i32, i32
  }
  func.func @transform_6(%arg0: i32) -> (i32, i32) {
    %c0_i32 = arith.constant 0 : i32
    %c0_i32_0 = arith.constant 0 : i32
    %c0_i32_1 = arith.constant 0 : i32
    return %c0_i32, %c0_i32_0 : i32, i32
  }
  func.func @transform_7(%arg0: i32) -> (i32, i32) {
    %c0_i32 = arith.constant 0 : i32
    %c0_i32_0 = arith.constant 0 : i32
    %c0_i32_1 = arith.constant 0 : i32
    return %c0_i32, %c0_i32_0 : i32, i32
  }
  func.func @transform_8(%arg0: i32) -> (i32, i32) {
    %c0_i32 = arith.constant 0 : i32
    %c0_i32_0 = arith.constant 0 : i32
    %c0_i32_1 = arith.constant 0 : i32
    return %c0_i32, %c0_i32_0 : i32, i32
  }
  func.func @transform_9(%arg0: i32) -> (i32, i32) {
    %c0_i32 = arith.constant 0 : i32
    %c0_i32_0 = arith.constant 0 : i32
    return %c0_i32, %arg0 : i32, i32
  }
}

</mosaic_0001>

<bundles_post_ra>
// kernel: tpu_custom_call.1
= control target key start
LH: loop header
LB: loop body
LE: loop exit
PB: predicated region body
PF: predicated region fallthrough
CT: control target
= control target key end

     0   :  { %s3779_s0 = inlined_call_operand.hbm [shape: bf16[512,896], index: 0, kind: input, shape index: {}]   ;;  %s3780_s1 = inlined_call_operand.hbm [shape: bf16[896,128], index: 1, kind: input, shape index: {}]   ;;  %s3781_s2 = inlined_call_operand.vmem [shape: f32[1,128], index: 2, kind: input, shape index: {}]   ;;  %s3782_s3 = inlined_call_operand.hbm [shape: bf16[128,128], index: 3, kind: input, shape index: {}]   ;;  %s3783_s4 = inlined_call_operand.vmem [shape: f32[1,128], index: 4, kind: input, shape index: {}]   ;;  %s3784_s5 = inlined_call_operand.hbm [shape: bf16[128,128], index: 5, kind: input, shape index: {}]   ;;  %s3785_s6 = inlined_call_operand.vmem [shape: f32[1,128], index: 6, kind: input, shape index: {}]   ;;  %s3786_s7 = inlined_call_operand.vmem [shape: f32[1,128], index: 7, kind: input, shape index: {}]   ;;  %s3787_s8 = inlined_call_operand.<no memory space> [shape: f32[1,1], index: 8, kind: input, shape index: {}]   ;;  %s3788_s9 = inlined_call_operand.hbm [shape: f32[1,512], index: 9, kind: output, shape index: {}]  }
   0x1   :  { %3793 = sst [smem:[#allocation16_spill]] %s3780_s1  ;;  %v14_v0 = vstv %s3787_s8 }
   0x2   :  { %3794 = sst [smem:[#allocation17_spill]] %s3782_s3  ;;  %15 = vst [vmem:[#allocation2] sm:$0x1] %v14_v0 }
   0x3   :  { %16 = vsyncpa [#allocation4], 0 }
   0x4   :  { %18 = vsyncpa [#allocation4 + $0x1], 0 }
   0x5   :  { %19 = vsyncpa [#allocation7], 0 }
   0x6   :  { %20 = vsyncpa [#allocation10], 0 }
   0x7   :  { %21 = vsyncpa [#allocation5], 0 }
   0x8   :  { %23 = vsyncpa [#allocation5 + $0x1], 0  ;;  %s3309_s11 = smov 0   ;;  %s3311_s12 = smov 0  }
   0x9   :  { %s3313_s13 = smov 0   ;;  %s3315_s14 = smov 0  }
   0xa LB: > { %s3330_s8 = sadd.s32 4294967295, %s3242_s14   ;;  %s2285_s15 = sadd.s32 4294967294, %s3242_s14   ;;  %s3242_s14 = sphi %s3315_s14, %s3815_s14   ;;  %s3238_s13 = sphi %s3313_s13, %s3814_s13   ;;  %s3234_s12 = sphi %s3311_s12, %s3813_s12   ;;  %s3230_s11 = sphi %s3309_s11, %s3812_s11  }
   0xb   : > { %p49_p0 = scmp.ne.s32.totalorder %s3234_s12, %s3230_s11  ;;  %p3789_p1 = scmp.eq.s32.totalorder %s3330_s8, 0 }
   0xc   : > { %p247_p3 = scmp.eq.s32.totalorder %s2285_s15, 3  ;;  %p2286_p5 = scmp.ge.s32.totalorder %s3242_s14, 1 }
   0xd   : > { %p3339_p4 = por %p3789_p1, %p49_p0  ;;  %p254_p7 = scmp.lt.s32.totalorder %s3242_s14, 5 }
   0xe   : > { %p3344_p6 = por %p247_p3, %p49_p0  ;;  %s3244_s19 = smov [#allocation6]  }
   0xf   : > { %s3795_s16 = scalar_select %p3339_p4, 1, 0 }
  0x10   : > { %s3796_s17 = scalar_select %p3344_p6, 1, 0 }
  0x11   : > { %p3349_p8 = pnand %p2286_p5, %p254_p7  ;;  %s266_s20 = sshll.u32 %s3244_s19, 4  ;;  %s267_s20 = int_to_ptr.vmem [resolvable:$true] %s266_s20 }
  0x12   : > { %s3245_s22 = smov [#allocation8]   ;;  %s3246_s24 = smov [#allocation9]  }
  0x13   : > { %s3797_s18 = scalar_select %p3349_p8, 1, 0 }
  0x14   : > { %p2839_p9 = pneg %p3349_p8  ;;  %s282_s23 = sshll.u32 %s3245_s22, 4  ;;  %s283_s23 = int_to_ptr.vmem [resolvable:$true] %s282_s23 }
  0x15   : > { %s298_s25 = sshll.u32 %s3246_s24, 4  ;;  %s3075_s26 = scalar_lea.vmem %s267_s20, 7168  ;;  %s299_s25 = int_to_ptr.vmem [resolvable:$true] %s298_s25 }
  0x16   : > { %p3357_p10 = pnand %p2839_p9, %p3789_p1  ;;  %p3076_p12 = scmp.ne.s32.totalorder %s267_s20, %s3075_s26 }
  0x17   : > { %p3083_p3 = scmp.lt.s32.totalorder %s267_s20, %s267_s20  ;;  %p3084_p5 = scmp.lt.s32.totalorder %s3075_s26, %s3075_s26 }
  0x18   : > { %p3066_p11 = pneg %p3357_p10 }
  0x19   : > { %p3085_p7 = por %p3084_p5, %p3083_p3 }
  0x1a   : > { %p3078_p13 = pnand %p3076_p12, %p3066_p11 }
  0x1c   : > { %p3079_p0 = pneg %p3078_p13 }
  0x1e   : > { %p3086_p9 = pnand %p3085_p7, %p3079_p0 }
  0x20   : > { %3089 = shalt.err (!%p3086_p9)
}
  0x21   : > { %s3247_s27 = smov 64   ;;  %s3248_s28 = smov 4  }
  0x22   : > { %s3799_s1 = sld [smem:[#allocation16_spill]]  ;;  %s3101_s10 = scalar_lea.vmem %s283_s23, 1024 }
  0x23   : > { %p3102_p1 = scmp.ne.s32.totalorder %s283_s23, %s3101_s10  ;;  %p3109_p2 = scmp.lt.s32.totalorder %s283_s23, %s283_s23 }
  0x24   : > { %p3110_p6 = scmp.lt.s32.totalorder %s3101_s10, %s3101_s10 }
  0x25   : > { %p3104_p12 = pnand %p3102_p1, %p3066_p11 }
  0x26   : > { %p3111_p3 = por %p3110_p6, %p3109_p2 }
  0x27   : > { %p3105_p13 = pneg %p3104_p12 }
  0x28   : > { %2842 = dma.hbm_to_vmem [thread:$0]  (!%p3357_p10), %s3799_s1, 7168, %s267_s20, [#allocation7], %s3247_s27, %s3247_s27, %s3248_s28  }
  0x29   : > { %p3112_p0 = pnand %p3111_p3, %p3105_p13 }
  0x2b   : > { %3115 = shalt.err (!%p3112_p0)
}
  0x2c   : > { %s3800_s3 = sld [smem:[#allocation17_spill]]  ;;  %s3127_s20 = scalar_lea.vmem %s299_s25, 1024 }
  0x2d   : > { %p3128_p5 = scmp.ne.s32.totalorder %s299_s25, %s3127_s20  ;;  %p3135_p9 = scmp.lt.s32.totalorder %s299_s25, %s299_s25 }
  0x2e   : > { %p3136_p12 = scmp.lt.s32.totalorder %s3127_s20, %s3127_s20 }
  0x2f   : > { %p3130_p7 = pnand %p3128_p5, %p3066_p11 }
  0x30   : > { %p3137_p4 = por %p3136_p12, %p3135_p9 }
  0x31   : > { %p3131_p1 = pneg %p3130_p7 }
  0x32   : > { %2845 = dma.hbm_to_vmem [thread:$0]  (!%p3357_p10), %s3800_s3, 1024, %s283_s23, [#allocation7], %s3247_s27, %s3247_s27, %s3248_s28  }
  0x33   : > { %p3138_p2 = pnand %p3137_p4, %p3131_p1 }
  0x35   : > { %3141 = shalt.err (!%p3138_p2)
}
  0x36   : > { %2848 = dma.hbm_to_vmem [thread:$0]  (!%p3357_p10), %s3784_s5, 1024, %s299_s25, [#allocation10], %s3247_s27, %s3247_s27, %s3248_s28  }
  0x37   : > { %s3388_s23 = sadd.s32 1, %s3242_s14   ;;  %s36_s21 = sadd.s32 1, %s3238_s13 }
  0x38   : > { %s33_s26 = ssub.s32 %s3242_s14, %s3388_s23  ;;  %p43_p6 = scmp.ne.s32.totalorder %s3238_s13, %s3234_s12 }
  0x39   : > { %p34_p4 = scmp.eq.s32.totalorder %s33_s26, 0  ;;  %p44_p11 = scmp.eq.s32.totalorder %s3242_s14, 0 }
  0x3a   : > { %p2860_p13 = scmp.lt.s32.totalorder %s3242_s14, 4  ;;  %p3801_p0 = scmp.eq.s32.totalorder %s3330_s8, 3 }
  0x3b   : > { %s3398_s29 = scalar_select %p34_p4, %s3238_s13, %s36_s21  }
  0x3c   : > { %p45_p3 = por %p44_p11, %p43_p6  ;;  %p3402_p5 = por %p3801_p0, %p43_p6 }
  0x3d   : > { %s321_s10 = sand.u32 1, %s3238_s13   ;;  %s2821_s15 = smul.u32 7168, %s3242_s14 }
  0x3e   : > { %s3802_s30 = scalar_select %p3402_p5, 1, 0 }
  0x3f   : > { %s2820_s25 = smul.u32 448, %s321_s10  ;;  %s3411_s19 = scalar_lea.hbm %s3779_s0, %s2821_s15 }
  0x40   : > { %p3413_p10 = pnand %p2860_p13, %p45_p3  ;;  %s3419_s26 = scalar_lea.sflag [#allocation4], %s321_s10 }
  0x41   : > { %s325_s22 = scalar_lea.vmem [#allocation3], %s2820_s25  ;;  %s3142_s21 = scalar_lea.hbm %s3411_s19, 7168 }
  0x42   : > { %s333_s24 = sshll.u32 %s325_s22, 4  ;;  %p3143_p7 = scmp.ne.s32.totalorder %s3411_s19, %s3142_s21  ;;  %s3417_s24 = int_to_ptr.vmem [resolvable:$true] %s333_s24 }
  0x43   : > { %p3144_p1 = pneg %p3413_p10  ;;  %s3147_s28 = scalar_lea.hbm %s3779_s0, 28672 }
  0x44   : > { %p3148_p2 = scmp.lt.s32.totalorder %s3411_s19, %s3779_s0  ;;  %p3149_p4 = scmp.lt.s32.totalorder %s3147_s28, %s3142_s21 }
  0x45   : > { %p3145_p9 = pnand %p3144_p1, %p3143_p7 }
  0x46   : > { %p3150_p6 = por %p3149_p4, %p3148_p2 }
  0x47   : > { %p3146_p12 = pneg %p3145_p9 }
  0x49   : > { %p3151_p11 = pnand %p3150_p6, %p3146_p12 }
  0x4b   : > { %3154 = shalt.err (!%p3151_p11)
}
  0x4c   : > { %s3155_s10 = scalar_lea.vmem %s3417_s24, 7168  ;;  %s3249_s25 = smov [#allocation3]  }
  0x4d   : > { %p3156_p13 = scmp.ne.s32.totalorder %s3417_s24, %s3155_s10  ;;  %s3160_s22 = sshll.u32 %s3249_s25, 4  ;;  %s3161_s22 = int_to_ptr.vmem [resolvable:$false] %s3160_s22 }
  0x4e   : > { %s3162_s15 = scalar_lea.vmem %s3161_s22, 14336  ;;  %p3163_p7 = scmp.lt.s32.totalorder %s3417_s24, %s3161_s22 }
  0x4f   : > { %p3158_p3 = pnand %p3156_p13, %p3144_p1  ;;  %p3164_p9 = scmp.lt.s32.totalorder %s3162_s15, %s3155_s10 }
  0x51   : > { %p3159_p0 = pneg %p3158_p3  ;;  %p3165_p5 = por %p3164_p9, %p3163_p7 }
  0x53   : > { %p3166_p8 = pnand %p3165_p5, %p3159_p0 }
  0x55   : > { %3169 = shalt.err (!%p3166_p8)
}
  0x56   : > { %s3250_s1 = smov 448   ;;  %s3251_s3 = smov 28  }
  0x57   : > { %2852 = dma.hbm_to_vmem [thread:$0]  (!%p3413_p10), %s3411_s19, 7168, %s3417_s24, %s3419_s26, %s3250_s1, %s3250_s1, %s3251_s3  }
  0x58   : > { %p3804_p1 = scmp.ne.s32.totalorder %s3797_s18, 0 }
  0x59   : > { %s3443_s21 = sand.u32 (!%p3804_p1), 1, %s3234_s12   ;;  %p3805_p8 = scmp.ne.s32.totalorder (!%p3804_p1), %s3795_s16, 0 }
  0x5a   : > { %345 = sbr.rel (%p3804_p1) target bundleno = 1179 (0x49b), region = 56  ;;  %s348_s28 = scalar_lea.sflag (!%p3804_p1), [#allocation4], %s3443_s21 }
  0x5b   : > { %s2822_s27 = smul.u32 (!%p3804_p1), 448, %s3443_s21 }
  0x5d   : > { %s3447_s10 = scalar_lea.vmem (!%p3804_p1), [#allocation3], %s2822_s27 }
  0x5f   : > { %3213 = dma.done.wait (%p3805_p8), %s348_s28, 7168  }
  0x60   : > { %3215 = vsyncadd (%p3805_p8), %s348_s28, 4294960128  ;;  %p3806_p5 = scmp.eq.s32.totalorder %s3330_s8, 0 }
  0x62   : > { %3217 = dma.done.wait (%p3806_p5), [#allocation7], 8192   ;;  %p3807_p10 = pmov %p3806_p5 }
  0x63   : > { %p3808_p12 = pmov %p3806_p5 }
  0x64   : > { %3219 = vsyncadd (%p3807_p10), [#allocation7], 4294959104 }
  0x65   : > { %3221 = dma.done.wait (%p3808_p12), [#allocation10], 1024   ;;  %p3809_p2 = pmov %p3806_p5 }
  0x66   : > { %v2908_v1 = vld [vmem:[#allocation6 + $0x78] sm:$0xff]   ;;  %v2912_v5 = vld [vmem:[#allocation6 + $0x70] sm:$0xff]   ;;  %v2916_v9 = vld [vmem:[#allocation6 + $0x68] sm:$0xff]   ;;  %s2429_s15 = sshll.u32 %s3330_s8, 4  ;;  %s396_s1 = scalar_lea.vmem [#allocation11], %s3443_s21 }
  0x67   : > { %3223 = vsyncadd (%p3809_p2), [#allocation10], 4294966272  ;;  %v2909_v2 = vld [vmem:[#allocation6 + $0x38] sm:$0xff]   ;;  %2432 = vmatprep.subr.bf16.mxu0 %v2908_v1  ;;  %v2913_v6 = vld [vmem:[#allocation6 + $0x30] sm:$0xff]   ;;  %s2190_s3 = sshll.u32 %s396_s1, 4  ;;  %s2178_s16 = scalar_lea.sflag [#allocation5], %s3443_s21  ;;  %s2191_s3 = int_to_ptr.vmem [resolvable:$true] %s2190_s3 }
  0x68   : > { %v2910_v3 = vld [vmem:[#allocation6 + $0xf8] sm:$0xff]   ;;  %2433 = vmatpush3.bf16.msra.mxu0 %v2909_v2  ;;  %v2914_v7 = vld [vmem:[#allocation6 + $0xf0] sm:$0xff]   ;;  %v2917_v10 = vld [vmem:[#allocation6 + $0x28] sm:$0xff]   ;;  %s3170_s18 = scalar_lea.vmem %s2191_s3, 16  ;;  %p3810_p6 = scmp.ne.s32.totalorder %s3802_s30, 0 }
  0x69   : > { %v2911_v4 = vld [vmem:[#allocation6 + $0xb8] sm:$0xff]   ;;  %2496 = vmatprep.subr.bf16.mxu1 %v2910_v3  ;;  %2434 = vmatprep.subr.bf16.mxu0 %v2912_v5  ;;  %v2915_v8 = vld [vmem:[#allocation6 + $0xb0] sm:$0xff]   ;;  %v2918_v11 = vld [vmem:[#allocation6 + $0xe8] sm:$0xff]   ;;  %p3171_p4 = scmp.ne.s32.totalorder %s2191_s3, %s3170_s18  ;;  %s3255_s19 = smov [#allocation11]  }
  0x6a   : > { %2497 = vmatpush3.bf16.msra.mxu1 %v2911_v4  ;;  %v2919_v12 = vld [vmem:[#allocation6 + $0xa8] sm:$0xff]   ;;  %v2920_v13 = vld [vmem:[#allocation6 + $0x60] sm:$0xff]   ;;  %v2924_v17 = vld [vmem:[#allocation6 + $0x58] sm:$0xff]   ;;  %s3174_s20 = sshll.u32 %s3255_s19, 4  ;;  %s3175_s20 = int_to_ptr.vmem [resolvable:$false] %s3174_s20 }
  0x6b   : > { %2498 = vmatprep.subr.bf16.mxu1 %v2914_v7  ;;  %v2921_v14 = vld [vmem:[#allocation6 + $0x20] sm:$0xff]   ;;  %v2925_v18 = vld [vmem:[#allocation6 + $0x18] sm:$0xff]   ;;  %v2928_v21 = vld [vmem:[#allocation6 + $0x50] sm:$0xff]   ;;  %p3172_p11 = pnand %p3171_p4, %p3810_p6  ;;  %s3176_s8 = scalar_lea.vmem %s3175_s20, 32 }
  0x6c   : > { %2435 = vmatpush3.bf16.msra.mxu0 %v2913_v6  ;;  %v2922_v15 = vld [vmem:[#allocation6 + $0xe0] sm:$0xff]   ;;  %v2926_v19 = vld [vmem:[#allocation6 + $0xd8] sm:$0xff]   ;;  %v2929_v22 = vld [vmem:[#allocation6 + $0x10] sm:$0xff]   ;;  %p3177_p3 = scmp.lt.s32.totalorder %s2191_s3, %s3175_s20  ;;  %p3178_p0 = scmp.lt.s32.totalorder %s3176_s8, %s3170_s18 }
  0x6d   : > { %2436 = vmatprep.subr.bf16.mxu0 %v2916_v9  ;;  %v2923_v16 = vld [vmem:[#allocation6 + $0xa0] sm:$0xff]   ;;  %v2927_v20 = vld [vmem:[#allocation6 + $0x98] sm:$0xff]   ;;  %v2930_v23 = vld [vmem:[#allocation6 + $0xd0] sm:$0xff]   ;;  %p3173_p13 = pneg %p3172_p11 }
  0x6e   : > { %2499 = vmatpush3.bf16.msra.mxu1 %v2915_v8  ;;  %v2931_v24 = vld [vmem:[#allocation6 + $0x90] sm:$0xff]   ;;  %v2932_v25 = vld [vmem:[#allocation6 + $0x48] sm:$0xff]   ;;  %v2936_v29 = vld [vmem:[#allocation6 + $0x40] sm:$0xff]   ;;  %p3179_p7 = por %p3178_p0, %p3177_p3 }
  0x6f   : > { %2500 = vmatprep.subr.bf16.mxu1 %v2918_v11  ;;  %v2933_v26 = vld [vmem:[#allocation6 + $0x8] sm:$0xff]   ;;  %v2937_v30 = vld [vmem:[#allocation6] sm:$0xff]   ;;  %v2943_v35 = vld [vmem:[#allocation6 + $0x178] sm:$0xff]  }
  0x70   : > { %2437 = vmatpush3.bf16.msra.mxu0 %v2917_v10  ;;  %v2934_v27 = vld [vmem:[#allocation6 + $0xc8] sm:$0xff]   ;;  %v2938_v31 = vld [vmem:[#allocation6 + $0xc0] sm:$0xff]   ;;  %v2947_v38 = vld [vmem:[#allocation6 + $0x138] sm:$0xff]   ;;  %p3180_p9 = pnand %p3179_p7, %p3173_p13 }
  0x71   : > { %2438 = vmatprep.subr.bf16.mxu0 %v2920_v13  ;;  %v2935_v28 = vld [vmem:[#allocation6 + $0x88] sm:$0xff]   ;;  %v2939_v32 = vld [vmem:[%s3447_s10] ss:$28 sps:$4 sm:$0xff]   ;;  %v2950_v40 = vld [vmem:[%s3447_s10 + $0x38] ss:$28 sps:$4 sm:$0xff]  }
  0x72   : > { %2501 = vmatpush3.bf16.msra.mxu1 %v2919_v12  ;;  %v2941_v33 = vld [vmem:[%s3447_s10 + $0x4] ss:$28 sps:$4 sm:$0xff]   ;;  %v2946_v37 = vld [vmem:[%s3447_s10 + $0xc] ss:$28 sps:$4 sm:$0xff]   ;;  %v2948_v39 = vld [vmem:[%s3447_s10 + $0x3c] ss:$28 sps:$4 sm:$0xff]  }
  0x73   : > { %2502 = vmatprep.subr.bf16.mxu1 %v2922_v15  ;;  %v2942_v34 = vld [vmem:[#allocation6 + $0x80] sm:$0xff]   ;;  %1238 = vmatprep.mubr.bf16.mxu0 %v2941_v33  ;;  %v2951_v41 = vld [vmem:[#allocation6 + $0x170] sm:$0xff]   ;;  %v2959_v46 = vld [vmem:[#allocation6 + $0x168] sm:$0xff]  }
  0x74   : > { %2439 = vmatpush3.bf16.msra.mxu0 %v2921_v14  ;;  %v2944_v36 = vld [vmem:[%s3447_s10 + $0x8] ss:$28 sps:$4 sm:$0xff]   ;;  %1335 = vmatprep.mubr.bf16.mxu1 %v2946_v37  ;;  %v2954_v43 = vld [vmem:[#allocation6 + $0x130] sm:$0xff]   ;;  %v2955_v44 = vld [vmem:[%s3447_s10 + $0x40] ss:$28 sps:$4 sm:$0xff]  }
  0x75   : > { %2440 = vmatprep.subr.bf16.mxu0 %v2924_v17  ;;  %v2952_v42 = vld [vmem:[%s3447_s10 + $0x44] ss:$28 sps:$4 sm:$0xff]   ;;  %v2956_v45 = vld [vmem:[%s3447_s10 + $0x74] ss:$28 sps:$4 sm:$0xff]   ;;  %v2960_v47 = vld [vmem:[%s3447_s10 + $0x7c] ss:$28 sps:$4 sm:$0xff]  }
  0x76   : > { %2503 = vmatpush3.bf16.msra.mxu1 %v2923_v16  ;;  %v2962_v48 = vld [vmem:[#allocation6 + $0x128] sm:$0xff]   ;;  %v2967_v51 = vld [vmem:[#allocation6 + $0x160] sm:$0xff]   ;;  %v2963_v52 = vld [vmem:[%s3447_s10 + $0x78] ss:$28 sps:$4 sm:$0xff]  }
  0x77   : > { %2504 = vmatprep.subr.bf16.mxu1 %v2926_v19  ;;  %v2958_v49 = vld [vmem:[%s3447_s10 + $0x70] ss:$28 sps:$4 sm:$0xff]   ;;  %v2970_v53 = vld [vmem:[#allocation6 + $0x120] sm:$0xff]   ;;  %v2975_v55 = vld [vmem:[#allocation6 + $0x158] sm:$0xff]  }
  0x78   : > { %2441 = vmatpush3.bf16.msra.mxu0 %v2925_v18  ;;  %v2964_v50 = vld [vmem:[%s3447_s10 + $0xac] ss:$28 sps:$4 sm:$0xff]   ;;  %v2968_v54 = vld [vmem:[%s3447_s10 + $0xb4] ss:$28 sps:$4 sm:$0xff]   ;;  %v2978_v57 = vld [vmem:[#allocation6 + $0x118] sm:$0xff]  }
  0x79   : > { %2442 = vmatprep.subr.bf16.mxu0 %v2928_v21  ;;  %v2966_v56 = vld [vmem:[%s3447_s10 + $0xa8] ss:$28 sps:$4 sm:$0xff]   ;;  %v2980_v59 = vld [vmem:[#allocation6 + $0x1b8] sm:$0xff]   ;;  %v2971_v60 = vld [vmem:[%s3447_s10 + $0xb0] ss:$28 sps:$4 sm:$0xff]  }
  0x7a   : > { %2505 = vmatpush3.bf16.msra.mxu1 %v2927_v20  ;;  %v2972_v58 = vld [vmem:[%s3447_s10 + $0xe4] ss:$28 sps:$4 sm:$0xff]   ;;  %v2976_v61 = vld [vmem:[%s3447_s10 + $0xec] ss:$28 sps:$4 sm:$0xff]   ;;  %v2984_v62 = vld [vmem:[#allocation6 + $0x150] sm:$0xff]  }
  0x7b   : > { %2506 = vmatprep.subr.bf16.mxu1 %v2930_v23  ;;  %v2985_v63 = vld [vmem:[#allocation6 + $0x1b0] sm:$0xff]   ;;  %v2990_v1 = vld [vmem:[#allocation6 + $0x1a8] sm:$0xff]   ;;  %v2974_v2 = vld [vmem:[%s3447_s10 + $0xe0] ss:$28 sps:$4 sm:$0xff]  }
  0x7c   : > { %2443 = vmatpush3.bf16.msra.mxu0 %v2929_v22  ;;  %v2988_v0 = vld [vmem:[#allocation6 + $0x110] sm:$0xff]   ;;  %v2979_v3 = vld [vmem:[%s3447_s10 + $0xe8] ss:$28 sps:$4 sm:$0xff]   ;;  %v2981_v4 = vld [vmem:[%s3447_s10 + $0x11c] ss:$28 sps:$4 sm:$0xff]  }
  0x7d   : > { %2444 = vmatprep.subr.bf16.mxu0 %v2932_v25  ;;  %v2994_v5 = vld [vmem:[#allocation6 + $0x148] sm:$0xff]   ;;  %v2995_v6 = vld [vmem:[#allocation6 + $0x1a0] sm:$0xff]   ;;  %v3000_v9 = vld [vmem:[#allocation6 + $0x198] sm:$0xff]  }
  0x7e   : > { %2507 = vmatpush3.bf16.msra.mxu1 %v2931_v24  ;;  %v2986_v7 = vld [vmem:[%s3447_s10 + $0x124] ss:$28 sps:$4 sm:$0xff]   ;;  %v2998_v8 = vld [vmem:[#allocation6 + $0x108] sm:$0xff]   ;;  %v2983_v10 = vld [vmem:[%s3447_s10 + $0x118] ss:$28 sps:$4 sm:$0xff]  }
  0x7f   : > { %2508 = vmatprep.subr.bf16.mxu1 %v2934_v27  ;;  %v3004_v11 = vld [vmem:[#allocation6 + $0x140] sm:$0xff]   ;;  %v2991_v13 = vld [vmem:[%s3447_s10 + $0x154] ss:$28 sps:$4 sm:$0xff]   ;;  %v2996_v16 = vld [vmem:[%s3447_s10 + $0x15c] ss:$28 sps:$4 sm:$0xff]  }
  0x80   : > { %2445 = vmatpush3.bf16.msra.mxu0 %v2933_v26  ;;  %v2989_v12 = vld [vmem:[%s3447_s10 + $0x120] ss:$28 sps:$4 sm:$0xff]   ;;  %v3005_v14 = vld [vmem:[#allocation6 + $0x190] sm:$0xff]   ;;  %v3010_v17 = vld [vmem:[#allocation6 + $0x188] sm:$0xff]  }
  0x81   : > { %2446 = vmatprep.subr.bf16.mxu0 %v2936_v29  ;;  %v3008_v15 = vld [vmem:[#allocation6 + $0x100] sm:$0xff]   ;;  %v2993_v18 = vld [vmem:[%s3447_s10 + $0x150] ss:$28 sps:$4 sm:$0xff]   ;;  %v2999_v21 = vld [vmem:[%s3447_s10 + $0x158] ss:$28 sps:$4 sm:$0xff]  }
  0x82   : > { %2509 = vmatpush3.bf16.msra.mxu1 %v2935_v28  ;;  %v3001_v19 = vld [vmem:[%s3447_s10 + $0x18c] ss:$28 sps:$4 sm:$0xff]   ;;  %v3014_v20 = vld [vmem:[#allocation6 + $0x180] sm:$0xff]   ;;  %v3006_v22 = vld [vmem:[%s3447_s10 + $0x194] ss:$28 sps:$4 sm:$0xff]  }
  0x83   : > { %2510 = vmatprep.subr.bf16.mxu1 %v2938_v31  ;;  %v3003_v23 = vld [vmem:[%s3447_s10 + $0x188] ss:$28 sps:$4 sm:$0xff]   ;;  %v3013_v24 = vld [vmem:[%s3447_s10 + $0x14] ss:$28 sps:$4 sm:$0xff]   ;;  %v3024_v33 = vld [vmem:[%s3447_s10 + $0xc0] ss:$28 sps:$4 sm:$0xff]  }
  0x84   : > { %2447 = vmatpush3.bf16.msra.mxu0 %v2937_v30  ;;  %v3009_v25 = vld [vmem:[%s3447_s10 + $0x190] ss:$28 sps:$4 sm:$0xff]   ;;  %v3015_v26 = vld [vmem:[%s3447_s10 + $0x18] ss:$28 sps:$4 sm:$0xff]   ;;  %v3023_v30 = vld [vmem:[%s3447_s10 + $0x88] ss:$28 sps:$4 sm:$0xff]  }
  0x85   : > { %2560 = vmatprep.subr.bf16.mxu0 %v2943_v35  ;;  %v3011_v27 = vld [vmem:[%s3447_s10 + $0x10] ss:$28 sps:$4 sm:$0xff]   ;;  %v3019_v31 = vld [vmem:[%s3447_s10 + $0x48] ss:$28 sps:$4 sm:$0xff]   ;;  %v3022_v35 = vld [vmem:[%s3447_s10 + $0x80] ss:$28 sps:$4 sm:$0xff]  }
  0x86   : > { %2511 = vmatpush3.bf16.msra.mxu1 %v2942_v34  ;;  %v3017_v28 = vld [vmem:[%s3447_s10 + $0x4c] ss:$28 sps:$4 sm:$0xff]   ;;  %v3031_v34 = vld [vmem:[%s3447_s10 + $0xf8] ss:$28 sps:$4 sm:$0xff]  }
  0x87   : > { %1239 = vmatmul.mubr.bf16.vlgmr.msra.gmra.mxu0 %v2939_v32  ;;  %2689 = vmatprep.subr.bf16.mxu1 %v2980_v59  ;;  %v3016_v29 = vld [vmem:[%s3447_s10 + $0x50] ss:$28 sps:$4 sm:$0xff]   ;;  %v3020_v32 = vld [vmem:[%s3447_s10 + $0x84] ss:$28 sps:$4 sm:$0xff]  }
  0x88   : > { %2561 = vmatpush3.bf16.msra.mxu0 %v2947_v38  ;;  %1246 = vmatprep.mubr.bf16.mxu0 %v2948_v39  ;;  %v3032_v37 = vld [vmem:[%s3447_s10 + $0x130] ss:$28 sps:$4 sm:$0xff]   ;;  %v3039_v38 = vld [vmem:[%s3447_s10 + $0x168] ss:$28 sps:$4 sm:$0xff]   ;;  %v3027_v39 = vld [vmem:[%s3447_s10 + $0xb8] ss:$28 sps:$4 sm:$0xff]  }
  0x89   : > { %1336 = vmatmul.mubr.bf16.vlgmr.msra.gmra.mxu1 %v2944_v36  ;;  %2562 = vmatprep.subr.bf16.mxu0 %v2951_v41  ;;  %v3025_v36 = vld [vmem:[%s3447_s10 + $0xbc] ss:$28 sps:$4 sm:$0xff]  }
  0x8a   : > { %1343 = vmatprep.mubr.bf16.mxu1 %v2952_v42  ;;  %2690 = vmatpush3.bf16.msra.mxu1 %v2980_v59  ;;  %v3040_v41 = vld [vmem:[%s3447_s10 + $0x1a0] ss:$28 sps:$4 sm:$0xff]   ;;  %v3030_v42 = vld [vmem:[%s3447_s10 + $0xf0] ss:$28 sps:$4 sm:$0xff]  }
  0x8b   : > { %2691 = vmatprep.subr.bf16.mxu1 %v2985_v63 }
  0x8c   : > { %2563 = vmatpush3.bf16.msra.mxu0 %v2954_v43  ;;  %v3033_v43 = vld [vmem:[%s3447_s10 + $0x12c] ss:$28 sps:$4 sm:$0xff]  }
  0x8d   : > { %2564 = vmatprep.subr.bf16.mxu0 %v2959_v46  ;;  %v3038_v46 = vld [vmem:[%s3447_s10 + $0x160] ss:$28 sps:$4 sm:$0xff]  }
  0x8e   : > { %2692 = vmatpush3.bf16.msra.mxu1 %v2985_v63 }
  0x8f   : > { %1247 = vmatmul.mubr.bf16.gmra.mxu0 %v2950_v40  ;;  %2693 = vmatprep.subr.bf16.mxu1 %v2990_v1  ;;  %v3028_v40 = vld [vmem:[%s3447_s10 + $0xf4] ss:$28 sps:$4 sm:$0xff]  }
  0x90   : > { %1254 = vmatprep.mubr.bf16.mxu0 %v2956_v45  ;;  %2565 = vmatpush3.bf16.msra.mxu0 %v2962_v48  ;;  %v3036_v45 = vld [vmem:[%s3447_s10 + $0x164] ss:$28 sps:$4 sm:$0xff]   ;;  %v3043_v48 = vld [vmem:[%s3447_s10 + $0x198] ss:$28 sps:$4 sm:$0xff]  }
  0x91   : > { %1344 = vmatmul.mubr.bf16.gmra.mxu1 %v2955_v44  ;;  %2566 = vmatprep.subr.bf16.mxu0 %v2967_v51  ;;  %v3035_v44 = vld [vmem:[%s3447_s10 + $0x128] ss:$28 sps:$4 sm:$0xff]  }
  0x92   : > { %1351 = vmatprep.mubr.bf16.mxu1 %v2960_v47  ;;  %2694 = vmatpush3.bf16.msra.mxu1 %v2990_v1  ;;  %v3041_v47 = vld [vmem:[%s3447_s10 + $0x19c] ss:$28 sps:$4 sm:$0xff]   ;;  %v3046_v51 = vld [vmem:[#allocation8 + $0x28] sm:$0xff]   ;;  %s3743_s10 = scalar_lea.hbm %s3788_s9, %s2429_s15 }
  0x93   : > { %2695 = vmatprep.subr.bf16.mxu1 %v2995_v6 }
  0x94   : > { %2567 = vmatpush3.bf16.msra.mxu0 %v2970_v53  ;;  %v3048_v53 = vld [vmem:[#allocation8 + $0x18] sm:$0xff]  }
  0x95   : > { %2568 = vmatprep.subr.bf16.mxu0 %v2975_v55  ;;  %v3050_v55 = vld [vmem:[#allocation8 + $0x8] sm:$0xff]  }
  0x96   : > { %2696 = vmatpush3.bf16.msra.mxu1 %v2995_v6 }
  0x97   : > { %1255 = vmatmul.mubr.bf16.gmra.mxu0 %v2958_v49  ;;  %2697 = vmatprep.subr.bf16.mxu1 %v3000_v9  ;;  %v3044_v49 = vld [vmem:[#allocation8 + $0x38] sm:$0xff]  }
  0x98   : > { %1262 = vmatprep.mubr.bf16.mxu0 %v2964_v50  ;;  %2569 = vmatpush3.bf16.msra.mxu0 %v2978_v57  ;;  %v3045_v50 = vld [vmem:[#allocation8 + $0x30] sm:$0xff]  }
  0x99   : > { %1352 = vmatmul.mubr.bf16.gmra.mxu1 %v2963_v52  ;;  %2570 = vmatprep.subr.bf16.mxu0 %v2984_v62  ;;  %v3047_v52 = vld [vmem:[#allocation8 + $0x20] sm:$0xff]  }
  0x9a   : > { %1359 = vmatprep.mubr.bf16.mxu1 %v2968_v54  ;;  %2698 = vmatpush3.bf16.msra.mxu1 %v3000_v9  ;;  %v3049_v54 = vld [vmem:[#allocation8 + $0x10] sm:$0xff]  }
  0x9b   : > { %2699 = vmatprep.subr.bf16.mxu1 %v3005_v14  ;;  %v3053_v9 = vld [vmem:[#allocation9 + $0x30] sm:$0xff]  }
  0x9c   : > { %2571 = vmatpush3.bf16.msra.mxu0 %v2988_v0 }
  0x9d   : > { %2572 = vmatprep.subr.bf16.mxu0 %v2994_v5 }
  0x9e   : > { %2700 = vmatpush3.bf16.msra.mxu1 %v3005_v14 }
  0x9f   : > { %1263 = vmatmul.mubr.bf16.gmra.mxu0 %v2966_v56  ;;  %2701 = vmatprep.subr.bf16.mxu1 %v3010_v17  ;;  %v3051_v56 = vld [vmem:[#allocation8] sm:$0xff]  }
  0xa0   : > { %1270 = vmatprep.mubr.bf16.mxu0 %v2972_v58  ;;  %2573 = vmatpush3.bf16.msra.mxu0 %v2998_v8  ;;  %v3520_v58 = vld [vmem:[%s3781_s2] ss:$0 sm:$0xff] }
  0xa1   : > { %1360 = vmatmul.mubr.bf16.gmra.mxu1 %v2971_v60  ;;  %2574 = vmatprep.subr.bf16.mxu0 %v3004_v11  ;;  %v3052_v8 = vld [vmem:[#allocation9 + $0x38] sm:$0xff]  }
  0xa2   : > { %1367 = vmatprep.mubr.bf16.mxu1 %v2976_v61  ;;  %2702 = vmatpush3.bf16.msra.mxu1 %v3010_v17  ;;  %v3054_v17 = vld [vmem:[#allocation9 + $0x28] sm:$0xff]  }
  0xa3   : > { %2703 = vmatprep.subr.bf16.mxu1 %v3014_v20 }
  0xa4   : > { %2575 = vmatpush3.bf16.msra.mxu0 %v3008_v15 }
  0xa5   : > { %2753 = vmatprep.subr.bf16.mxu0 %v3052_v8 }
  0xa6   : > { %2704 = vmatpush3.bf16.msra.mxu1 %v3014_v20 }
  0xa7   : > { %1271 = vmatmul.mubr.bf16.gmra.mxu0 %v2974_v2  ;;  %2721 = vmatprep.subr.bf16.mxu1 %v3044_v49 }
  0xa8   : > { %1278 = vmatprep.mubr.bf16.mxu0 %v2981_v4 }
  0xa9   : > { %1368 = vmatmul.mubr.bf16.gmra.mxu1 %v2979_v3 }
  0xaa   : > { %1375 = vmatprep.mubr.bf16.mxu1 %v2986_v7 }
  0xaf   : > { %1279 = vmatmul.mubr.bf16.gmra.mxu0 %v2983_v10 }
  0xb0   : > { %1286 = vmatprep.mubr.bf16.mxu0 %v2991_v13 }
  0xb1   : > { %1376 = vmatmul.mubr.bf16.gmra.mxu1 %v2989_v12 }
  0xb2   : > { %1383 = vmatprep.mubr.bf16.mxu1 %v2996_v16 }
  0xb7   : > { %1287 = vmatmul.mubr.bf16.gmra.mxu0 %v2993_v18 }
  0xb8   : > { %1294 = vmatprep.mubr.bf16.mxu0 %v3001_v19 }
  0xb9   : > { %1384 = vmatmul.mubr.bf16.gmra.mxu1 %v2999_v21 }
  0xba   : > { %1391 = vmatprep.mubr.bf16.mxu1 %v3006_v22 }
  0xbf   : > { %1295 = vmatmul.mubr.bf16.gmra.mxu0 %v3003_v23  ;;  %v3055_v23 = vld [vmem:[#allocation9 + $0x20] sm:$0xff]  }
  0xc0   : > { %1432 = vmatprep.mubr.bf16.mxu0 %v3013_v24 }
  0xc1   : > { %1392 = vmatmul.mubr.bf16.gmra.mxu1 %v3009_v25 }
  0xc2   : > { %2705 = vmatprep.mubr.bf16.mxu1 %v3015_v26 }
  0xc7   : > { %1433 = vmatmul.mubr.bf16.vlgmr.msra.gmra.mxu0 %v3011_v27 }
  0xc8   : > { %1440 = vmatprep.mubr.bf16.mxu0 %v3017_v28  ;;  %2754 = vmatpush3.bf16.msra.mxu0 %v3052_v8 }
  0xc9   : > { %2706 = vmatmul.mubr.bf16.vlgmr.msra.gmra.mxu1 %v3016_v29  ;;  %2755 = vmatprep.subr.bf16.mxu0 %v3053_v9 }
  0xca   : > { %2709 = vmatprep.mubr.bf16.mxu1 %v3023_v30  ;;  %2722 = vmatpush3.bf16.msra.mxu1 %v3044_v49 }
  0xcb   : > { %2723 = vmatprep.subr.bf16.mxu1 %v3045_v50 }
  0xcc   : > { %2756 = vmatpush3.bf16.msra.mxu0 %v3053_v9 }
  0xcd   : > { %2757 = vmatprep.subr.bf16.mxu0 %v3054_v17 }
  0xce   : > { %2724 = vmatpush3.bf16.msra.mxu1 %v3045_v50 }
  0xcf   : > { %1441 = vmatmul.mubr.bf16.gmra.mxu0 %v3019_v31  ;;  %2725 = vmatprep.subr.bf16.mxu1 %v3046_v51  ;;  %v3056_v31 = vld [vmem:[#allocation9 + $0x18] sm:$0xff]  }
  0xd0   : > { %1448 = vmatprep.mubr.bf16.mxu0 %v3020_v32  ;;  %2758 = vmatpush3.bf16.msra.mxu0 %v3054_v17 }
  0xd1   : > { %2710 = vmatmul.mubr.bf16.gmra.mxu1 %v3024_v33  ;;  %2759 = vmatprep.subr.bf16.mxu0 %v3055_v23 }
  0xd2   : > { %2713 = vmatprep.mubr.bf16.mxu1 %v3031_v34  ;;  %2726 = vmatpush3.bf16.msra.mxu1 %v3046_v51 }
  0xd3   : > { %2727 = vmatprep.subr.bf16.mxu1 %v3047_v52 }
  0xd4   : > { %2760 = vmatpush3.bf16.msra.mxu0 %v3055_v23 }
  0xd5   : > { %2761 = vmatprep.subr.bf16.mxu0 %v3056_v31 }
  0xd6   : > { %2728 = vmatpush3.bf16.msra.mxu1 %v3047_v52 }
  0xd7   : > { %1449 = vmatmul.mubr.bf16.gmra.mxu0 %v3022_v35  ;;  %2729 = vmatprep.subr.bf16.mxu1 %v3048_v53 }
  0xd8   : > { %1456 = vmatprep.mubr.bf16.mxu0 %v3025_v36  ;;  %2762 = vmatpush3.bf16.msra.mxu0 %v3056_v31 }
  0xd9   : > { %2714 = vmatmul.mubr.bf16.gmra.mxu1 %v3032_v37 }
  0xda   : > { %2717 = vmatprep.mubr.bf16.mxu1 %v3039_v38  ;;  %2730 = vmatpush3.bf16.msra.mxu1 %v3048_v53 }
  0xdb   : > { %2731 = vmatprep.subr.bf16.mxu1 %v3049_v54 }
  0xde   : > { %2732 = vmatpush3.bf16.msra.mxu1 %v3049_v54 }
  0xdf   : > { %1457 = vmatmul.mubr.bf16.gmra.mxu0 %v3027_v39  ;;  %2733 = vmatprep.subr.bf16.mxu1 %v3050_v55 }
  0xe0   : > { %1464 = vmatprep.mubr.bf16.mxu0 %v3028_v40 }
  0xe1   : > { %2718 = vmatmul.mubr.bf16.gmra.mxu1 %v3040_v41 }
  0xe2   : > { %2734 = vmatpush3.bf16.msra.mxu1 %v3050_v55 }
  0xe3   : > { %2735 = vmatprep.subr.bf16.mxu1 %v3051_v56 }
  0xe6   : > { %2736 = vmatpush3.bf16.msra.mxu1 %v3051_v56 }
  0xe7   : > { %1465 = vmatmul.mubr.bf16.gmra.mxu0 %v3030_v42 }
  0xe8   : > { %1472 = vmatprep.mubr.bf16.mxu0 %v3033_v43 }
  0xef   : > { %1473 = vmatmul.mubr.bf16.gmra.mxu0 %v3035_v44 }
  0xf0   : > { %1480 = vmatprep.mubr.bf16.mxu0 %v3036_v45 }
  0xf7   : > { %1481 = vmatmul.mubr.bf16.gmra.mxu0 %v3038_v46 }
  0xf8   : > { %1488 = vmatprep.mubr.bf16.mxu0 %v3041_v47 }
  0xff   : > { %1489 = vmatmul.mubr.bf16.gmra.mxu0 %v3043_v48 }
 0x147   : > { %v2448_v57 = vpop.f32.mrf.mxu0 }
 0x149   : > { %v2449_v59 = vpop.f32.mrf.mxu0  ;;  %v2512_v61 = vpop.f32.mrf.mxu1 }
 0x14a   : > { %v2450_v60 = vadd.f32 %v2449_v59, %v2448_v57 }
 0x14b   : > { %v3522_v62 = vpop.f32.mrf.mxu0  ;;  %v2513_v0 = vpop.f32.mrf.mxu1 }
 0x14c   : > { %v1241_v63 = vadd.f32 %v2450_v60, %v3520_v58  ;;  %v2514_v1 = vadd.f32 %v2513_v0, %v2512_v61 }
 0x14d   : > { %v3525_v2 = vpop.f32.mrf.mxu0  ;;  %v3527_v3 = vpop.f32.mrf.mxu1 }
 0x14e   : > { %v3529_v4 = vadd.f32 %v2514_v1, %v1241_v63 }
 0x14f   : > { %v2454_v5 = vpop.f32.mrf.mxu0  ;;  %v3531_v6 = vpop.f32.mrf.mxu1 }
 0x151   : > { %v2455_v7 = vpop.f32.mrf.mxu0  ;;  %v2518_v11 = vpop.f32.mrf.mxu1 }
 0x152   : > { %v2456_v10 = vadd.f32 %v2455_v7, %v2454_v5 }
 0x153   : > { %v3533_v12 = vpop.f32.mrf.mxu0  ;;  %v2519_v14 = vpop.f32.mrf.mxu1 }
 0x154   : > { %v1249_v13 = vadd.f32 %v2456_v10, %v3520_v58  ;;  %v2520_v15 = vadd.f32 %v2519_v14, %v2518_v11 }
 0x155   : > { %v3536_v16 = vpop.f32.mrf.mxu0  ;;  %v3538_v18 = vpop.f32.mrf.mxu1 }
 0x156   : > { %v3540_v19 = vadd.f32 %v2520_v15, %v1249_v13 }
 0x157   : > { %v2460_v20 = vpop.f32.mrf.mxu0  ;;  %v3542_v21 = vpop.f32.mrf.mxu1 }
 0x159   : > { %v2461_v22 = vpop.f32.mrf.mxu0  ;;  %v2524_v25 = vpop.f32.mrf.mxu1 }
 0x15a   : > { %v2462_v24 = vadd.f32 %v2461_v22, %v2460_v20 }
 0x15b   : > { %v3544_v26 = vpop.f32.mrf.mxu0  ;;  %v2525_v28 = vpop.f32.mrf.mxu1 }
 0x15c   : > { %v1257_v27 = vadd.f32 %v2462_v24, %v3520_v58  ;;  %v2526_v29 = vadd.f32 %v2525_v28, %v2524_v25 }
 0x15d   : > { %v3547_v30 = vpop.f32.mrf.mxu0  ;;  %v3549_v32 = vpop.f32.mrf.mxu1 }
 0x15e   : > { %v3551_v33 = vadd.f32 %v2526_v29, %v1257_v27 }
 0x15f   : > { %v2466_v34 = vpop.f32.mrf.mxu0  ;;  %v3553_v35 = vpop.f32.mrf.mxu1 }
 0x161   : > { %v2467_v36 = vpop.f32.mrf.mxu0  ;;  %v2530_v38 = vpop.f32.mrf.mxu1 }
 0x162   : > { %v2468_v37 = vadd.f32 %v2467_v36, %v2466_v34 }
 0x163   : > { %v3555_v39 = vpop.f32.mrf.mxu0  ;;  %v2531_v41 = vpop.f32.mrf.mxu1 }
 0x164   : > { %v1265_v40 = vadd.f32 %v2468_v37, %v3520_v58  ;;  %v2532_v42 = vadd.f32 %v2531_v41, %v2530_v38 }
 0x165   : > { %v3558_v43 = vpop.f32.mrf.mxu0  ;;  %v3560_v44 = vpop.f32.mrf.mxu1 }
 0x166   : > { %v3562_v45 = vadd.f32 %v2532_v42, %v1265_v40 }
 0x167   : > { %v2472_v46 = vpop.f32.mrf.mxu0  ;;  %v3564_v47 = vpop.f32.mrf.mxu1 }
 0x169   : > { %v2473_v48 = vpop.f32.mrf.mxu0  ;;  %v2536_v50 = vpop.f32.mrf.mxu1 }
 0x16a   : > { %v2474_v49 = vadd.f32 %v2473_v48, %v2472_v46 }
 0x16b   : > { %v3566_v51 = vpop.f32.mrf.mxu0  ;;  %v2537_v53 = vpop.f32.mrf.mxu1 }
 0x16c   : > { %v1273_v52 = vadd.f32 %v2474_v49, %v3520_v58  ;;  %v2538_v54 = vadd.f32 %v2537_v53, %v2536_v50  ;;  %v2453_v49 = vadd.f32 %v3525_v2, %v3522_v62  ;;  %v2459_v62 = vadd.f32 %v3536_v16, %v3533_v12 }
 0x16d   : > { %v3569_v55 = vpop.f32.mrf.mxu0  ;;  %v3571_v56 = vpop.f32.mrf.mxu1 }
 0x16e   : > { %v3573_v57 = vadd.f32 %v2538_v54, %v1273_v52 }
 0x16f   : > { %v2478_v59 = vpop.f32.mrf.mxu0  ;;  %v3575_v60 = vpop.f32.mrf.mxu1 }
 0x171   : > { %v2479_v61 = vpop.f32.mrf.mxu0  ;;  %v2542_v0 = vpop.f32.mrf.mxu1 }
 0x172   : > { %v2480_v63 = vadd.f32 %v2479_v61, %v2478_v59  ;;  %v1244_v61 = vadd.f32 %v2453_v49, %v3520_v58  ;;  %v2465_v49 = vadd.f32 %v3547_v30, %v3544_v26 }
 0x173   : > { %v3577_v1 = vpop.f32.mrf.mxu0  ;;  %v2543_v7 = vpop.f32.mrf.mxu1 }
 0x174   : > { %v1281_v5 = vadd.f32 %v2480_v63, %v3520_v58  ;;  %v2544_v8 = vadd.f32 %v2543_v7, %v2542_v0  ;;  %v2517_v63 = vadd.f32 %v3531_v6, %v3527_v3  ;;  %v2523_v3 = vadd.f32 %v3542_v21, %v3538_v18 }
 0x175   : > { %v3580_v9 = vpop.f32.mrf.mxu0  ;;  %v3582_v10 = vpop.f32.mrf.mxu1 }
 0x176   : > { %v3584_v11 = vadd.f32 %v2544_v8, %v1281_v5 }
 0x177   : > { %v2484_v13 = vpop.f32.mrf.mxu0  ;;  %v3586_v14 = vpop.f32.mrf.mxu1 }
 0x179   : > { %v2485_v15 = vpop.f32.mrf.mxu0  ;;  %v2548_v20 = vpop.f32.mrf.mxu1 }
 0x17a   : > { %v2486_v17 = vadd.f32 %v2485_v15, %v2484_v13  ;;  %v1341_v15 = vadd.f32 %v2517_v63, %v1244_v61 }
 0x17b   : > { %v3588_v22 = vpop.f32.mrf.mxu0  ;;  %v2549_v24 = vpop.f32.mrf.mxu1 }
 0x17c   : > { %v1289_v23 = vadd.f32 %v2486_v17, %v3520_v58  ;;  %v2550_v25 = vadd.f32 %v2549_v24, %v2548_v20 }
 0x17d   : > { %v3591_v27 = vpop.f32.mrf.mxu0  ;;  %v3593_v28 = vpop.f32.mrf.mxu1 }
 0x17e   : > { %v3595_v29 = vadd.f32 %v2550_v25, %v1289_v23 }
 0x17f   : > { %v2490_v31 = vpop.f32.mrf.mxu0  ;;  %v3597_v34 = vpop.f32.mrf.mxu1 }
 0x181   : > { %v2491_v36 = vpop.f32.mrf.mxu0  ;;  %v2554_v38 = vpop.f32.mrf.mxu1 }
 0x182   : > { %v2492_v37 = vadd.f32 %v2491_v36, %v2490_v31  ;;  %v1252_v36 = vadd.f32 %v2459_v62, %v3520_v58 }
 0x183   : > { %v3599_v40 = vpop.f32.mrf.mxu0  ;;  %v2555_v42 = vpop.f32.mrf.mxu1 }
 0x184   : > { %v1297_v41 = vadd.f32 %v2492_v37, %v3520_v58  ;;  %v2556_v46 = vadd.f32 %v2555_v42, %v2554_v38 }
 0x185   : > { %v3602_v48 = vpop.f32.mrf.mxu0  ;;  %v3606_v50 = vpop.f32.mrf.mxu1 }
 0x186   : > { %v3608_v52 = vadd.f32 %v2556_v46, %v1297_v41  ;;  %v1349_v46 = vadd.f32 %v2523_v3, %v1252_v36 }
 0x187   : > { %v2576_v53 = vpop.f32.mrf.mxu0  ;;  %v3610_v54 = vpop.f32.mrf.mxu1 }
 0x189   : > { %v2577_v59 = vpop.f32.mrf.mxu0  ;;  %v2707_v5 = vpop.f32.mrf.mxu1 }
 0x18a   : > { %v2578_v0 = vadd.f32 %v2577_v59, %v2576_v53 }
 0x18b   : > { %v2579_v7 = vpop.f32.mrf.mxu0  ;;  %v1531_v13 = vpop.f32.mrf.mxu1 }
 0x18c   : > { %v1435_v8 = vadd.f32 %v2578_v0, %v3529_v4 }
 0x18d   : > { %v2580_v2 = vpop.f32.mrf.mxu0  ;;  %v2708_v23 = vpop.f32.mrf.mxu1 }
 0x18e   : > { %v2581_v17 = vadd.f32 %v2580_v2, %v2579_v7  ;;  %v1532_v20 = vadd.f32 %v1531_v13, %v1435_v8  ;;  %v1260_v13 = vadd.f32 %v2465_v49, %v3520_v58 }
 0x18f   : > { %v2582_v24 = vpop.f32.mrf.mxu0  ;;  %v1534_v31 = vpop.f32.mrf.mxu1 }
 0x190   : > { %v1438_v25 = vadd.f32 %v2581_v17, %v1341_v15  ;;  %v1610_v37 = vmul.f32 0.2, %v1532_v20  ;;  %vm1594_vm0 = vcmp.gt.f32.partialorder %v1532_v20, 0.0 }
 0x191   : > { %v2583_v6 = vpop.f32.mrf.mxu0  ;;  %v2711_v12 = vpop.f32.mrf.mxu1 }
 0x192   : > { %v2584_v4 = vadd.f32 %v2583_v6, %v2582_v24  ;;  %v1535_v38 = vadd.f32 %v1534_v31, %v1438_v25  ;;  %v1626_v63 = vsel %vm1594_vm0, %v1532_v20, %v1610_v37  ;;  %v2471_v25 = vadd.f32 %v3558_v43, %v3555_v39 }
 0x193   : > { %v2585_v41 = vpop.f32.mrf.mxu0  ;;  %v1547_v7 = vpop.f32.mrf.mxu1 }
 0x194   : > { %v1443_v16 = vadd.f32 %v2584_v4, %v3540_v19  ;;  %vm1595_vm1 = vcmp.gt.f32.partialorder %v1535_v38, 0.0  ;;  %v1611_v42 = vmul.f32 0.2, %v1535_v38  ;;  %v2529_v19 = vadd.f32 %v3553_v35, %v3549_v32 }
 0x195   : > { %v2586_v53 = vpop.f32.mrf.mxu0  ;;  %v2712_v30 = vpop.f32.mrf.mxu1 }
 0x196   : > { %v1540_v59 = vadd.f32 %v2707_v5, %v1443_v16  ;;  %v2587_v61 = vadd.f32 %v2586_v53, %v2585_v41  ;;  %v1627_v18 = vsel %vm1595_vm1, %v1535_v38, %v1611_v42  ;;  %v1357_v24 = vadd.f32 %v2529_v19, %v1260_v13 }
 0x197   : > { %v2588_v21 = vpop.f32.mrf.mxu0  ;;  %v1642_v0 = vpack.c.bf16 %v1627_v18, %v1626_v63  ;;  %v1268_v38 = vadd.f32 %v2471_v25, %v3520_v58  ;;  %v2535_v41 = vadd.f32 %v3564_v47, %v3560_v44 }
 0x198   : > { %v1446_v8 = vadd.f32 %v2587_v61, %v1349_v46  ;;  %v1612_v2 = vmul.f32 0.2, %v1540_v59  ;;  %vm1596_vm2 = vcmp.gt.f32.partialorder %v1540_v59, 0.0  ;;  %v2477_v61 = vadd.f32 %v3569_v55, %v3566_v51 }
 0x199   : > { %v2589_v62 = vpop.f32.mrf.mxu0  ;;  %2737 = vmatprep.mubr.bf16.mxu1 %v1642_v0 }
 0x19a   : > { %v1543_v15 = vadd.f32 %v2708_v23, %v1446_v8  ;;  %v2590_v17 = vadd.f32 %v2589_v62, %v2588_v21  ;;  %v1628_v36 = vsel %vm1596_vm2, %v1540_v59, %v1612_v2  ;;  %v1550_v23 = vpop.f32.mrf.mxu1  ;;  %v1365_v59 = vadd.f32 %v2535_v41, %v1268_v38 }
 0x19b   : > { %v2591_v26 = vpop.f32.mrf.mxu0  ;;  %v1276_v19 = vadd.f32 %v2477_v61, %v3520_v58 }
 0x19c   : > { %vm1597_vm3 = vcmp.gt.f32.partialorder %v1543_v15, 0.0  ;;  %v1613_v5 = vmul.f32 0.2, %v1543_v15  ;;  %v1451_v20 = vadd.f32 %v2590_v17, %v3551_v33  ;;  %v2715_v43 = vpop.f32.mrf.mxu1 }
 0x19d   : > { %v2592_v31 = vpop.f32.mrf.mxu0 }
 0x19e   : > { %v1629_v3 = vsel %vm1597_vm3, %v1543_v15, %v1613_v5  ;;  %v2593_v32 = vadd.f32 %v2592_v31, %v2591_v26  ;;  %v1548_v35 = vadd.f32 %v1547_v7, %v1451_v20  ;;  %v1563_v8 = vpop.f32.mrf.mxu1  ;;  %v2483_v20 = vadd.f32 %v3580_v9, %v3577_v1 }
 0x19f   : > { %v1643_v6 = vpack.c.bf16 %v1629_v3, %v1628_v36  ;;  %v2594_v37 = vpop.f32.mrf.mxu0 }
 0x1a0   : > { %v1454_v4 = vadd.f32 %v2593_v32, %v1357_v24  ;;  %v1614_v33 = vmul.f32 0.2, %v1548_v35  ;;  %vm1598_vm4 = vcmp.gt.f32.partialorder %v1548_v35, 0.0  ;;  %v2716_v55 = vpop.f32.mrf.mxu1 }
 0x1a1   : > { %v2595_v16 = vpop.f32.mrf.mxu0  ;;  %2738 = vmatmul.mubr.bf16.vlgmr.msra.gmra.mxu1 %v1643_v6  ;;  %v2547_v6 = vadd.f32 %v3586_v14, %v3582_v10 }
 0x1a2   : > { %v2596_v42 = vadd.f32 %v2595_v16, %v2594_v37  ;;  %v1551_v46 = vadd.f32 %v1550_v23, %v1454_v4  ;;  %v1630_v44 = vsel %vm1598_vm4, %v1548_v35, %v1614_v33  ;;  %v1566_v3 = vpop.f32.mrf.mxu1  ;;  %v1284_v35 = vadd.f32 %v2483_v20, %v3520_v58 }
 0x1a3   : > { %v2597_v39 = vpop.f32.mrf.mxu0  ;;  %v2489_v33 = vadd.f32 %v3591_v27, %v3588_v22 }
 0x1a4   : > { %v1459_v49 = vadd.f32 %v2596_v42, %v3562_v45  ;;  %vm1599_vm5 = vcmp.gt.f32.partialorder %v1551_v46, 0.0  ;;  %v1615_v53 = vmul.f32 0.2, %v1551_v46  ;;  %v2541_v45 = vadd.f32 %v3575_v60, %v3571_v56  ;;  %v2719_v9 = vpop.f32.mrf.mxu1 }
 0x1a5   : > { %v2598_v63 = vpop.f32.mrf.mxu0  ;;  %v1381_v16 = vadd.f32 %v2547_v6, %v1284_v35 }
 0x1a6   : > { %v1556_v18 = vadd.f32 %v2711_v12, %v1459_v49  ;;  %v2599_v21 = vadd.f32 %v2598_v63, %v2597_v39  ;;  %v1631_v47 = vsel %vm1599_vm5, %v1551_v46, %v1615_v53  ;;  %v1373_v5 = vadd.f32 %v2541_v45, %v1276_v19 }
 0x1a7   : > { %v2600_v0 = vpop.f32.mrf.mxu0  ;;  %v1644_v7 = vpack.c.bf16 %v1631_v47, %v1630_v44  ;;  %v1292_v63 = vadd.f32 %v2489_v33, %v3520_v58 }
 0x1a8   : > { %v1462_v13 = vadd.f32 %v2599_v21, %v1365_v59  ;;  %v1616_v2 = vmul.f32 0.2, %v1556_v18  ;;  %vm1600_vm6 = vcmp.gt.f32.partialorder %v1556_v18, 0.0  ;;  %v1579_v59 = vpop.f32.mrf.mxu1 }
 0x1a9   : > { %v2601_v62 = vpop.f32.mrf.mxu0  ;;  %2741 = vmatprep.mubr.bf16.mxu1 %v1644_v7 }
 0x1aa   : > { %v1559_v15 = vadd.f32 %v2712_v30, %v1462_v13  ;;  %v2602_v17 = vadd.f32 %v2601_v62, %v2600_v0  ;;  %v1632_v56 = vsel %vm1600_vm6, %v1556_v18, %v1616_v2  ;;  %v2720_v27 = vpop.f32.mrf.mxu1 }
 0x1ab   : > { %v2603_v51 = vpop.f32.mrf.mxu0 }
 0x1ac   : > { %v1617_v12 = vmul.f32 0.2, %v1559_v15  ;;  %v1467_v26 = vadd.f32 %v2602_v17, %v3573_v57  ;;  %vm1601_vm7 = vcmp.gt.f32.partialorder %v1559_v15, 0.0  ;;  %v1582_v2 = vpop.f32.mrf.mxu1 }
 0x1ad   : > { %v2604_v24 = vpop.f32.mrf.mxu0 }
 0x1ae   : > { %v2605_v25 = vadd.f32 %v2604_v24, %v2603_v51  ;;  %v1564_v31 = vadd.f32 %v1563_v8, %v1467_v26  ;;  %v1633_v60 = vsel %vm1601_vm7, %v1559_v15, %v1617_v12  ;;  %v2495_v8 = vadd.f32 %v3602_v48, %v3599_v40 }
 0x1af   : > { %v2606_v36 = vpop.f32.mrf.mxu0  ;;  %v1645_v30 = vpack.c.bf16 %v1633_v60, %v1632_v56 }
 0x1b0   : > { %v1470_v32 = vadd.f32 %v2605_v25, %v1373_v5  ;;  %v1618_v37 = vmul.f32 0.2, %v1564_v31  ;;  %vm1602_vm8 = vcmp.gt.f32.partialorder %v1564_v31, 0.0  ;;  %v1300_v51 = vadd.f32 %v2495_v8, %v3520_v58 }
 0x1b1   : > { %v2607_v57 = vpop.f32.mrf.mxu0  ;;  %2742 = vmatmul.mubr.bf16.gmra.mxu1 %v1645_v30 }
 0x1b2   : > { %v2608_v23 = vadd.f32 %v2607_v57, %v2606_v36  ;;  %v1567_v4 = vadd.f32 %v1566_v3, %v1470_v32  ;;  %v1634_v10 = vsel %vm1602_vm8, %v1564_v31, %v1618_v37  ;;  %v3058_v57 = vld [vmem:[#allocation9 + $0x8] sm:$0xff]   ;;  %v3059_v37 = vld [vmem:[#allocation9] sm:$0xff]  }
 0x1b3   : > { %v2609_v1 = vpop.f32.mrf.mxu0 }
 0x1b4   : > { %v1475_v38 = vadd.f32 %v2608_v23, %v3584_v11  ;;  %vm1603_vm9 = vcmp.gt.f32.partialorder %v1567_v4, 0.0  ;;  %v1619_v41 = vmul.f32 0.2, %v1567_v4  ;;  %v2553_v11 = vadd.f32 %v3597_v34, %v3593_v28 }
 0x1b5   : > { %v2610_v42 = vpop.f32.mrf.mxu0 }
 0x1b6   : > { %v1572_v46 = vadd.f32 %v2715_v43, %v1475_v38  ;;  %v2611_v39 = vadd.f32 %v2610_v42, %v2609_v1  ;;  %v1635_v14 = vsel %vm1603_vm9, %v1567_v4, %v1619_v41  ;;  %v1389_v7 = vadd.f32 %v2553_v11, %v1292_v63  ;;  %v3661_v4 = vld [vmem:[%s3783_s4] ss:$0 sm:$0xff] }
 0x1b7   : > { %v2612_v49 = vpop.f32.mrf.mxu0  ;;  %v1646_v53 = vpack.c.bf16 %v1635_v14, %v1634_v10 }
 0x1b8   : > { %v1478_v61 = vadd.f32 %v2611_v39, %v1381_v16  ;;  %v1620_v21 = vmul.f32 0.2, %v1572_v46  ;;  %vm1604_vm10 = vcmp.gt.f32.partialorder %v1572_v46, 0.0 }
 0x1b9   : > { %v2613_v18 = vpop.f32.mrf.mxu0  ;;  %2745 = vmatprep.mubr.bf16.mxu1 %v1646_v53 }
 0x1ba   : > { %v1575_v44 = vadd.f32 %v2716_v55, %v1478_v61  ;;  %v2614_v47 = vadd.f32 %v2613_v18, %v2612_v49  ;;  %v1636_v28 = vsel %vm1604_vm10, %v1572_v46, %v1620_v21  ;;  %v2559_v55 = vadd.f32 %v3610_v54, %v3606_v50 }
 0x1bb   : > { %v2615_v22 = vpop.f32.mrf.mxu0 }
 0x1bc   : > { %v1621_v43 = vmul.f32 0.2, %v1575_v44  ;;  %v1483_v0 = vadd.f32 %v2614_v47, %v3595_v29  ;;  %vm1605_vm11 = vcmp.gt.f32.partialorder %v1575_v44, 0.0  ;;  %v1397_v24 = vadd.f32 %v2559_v55, %v1300_v51 }
 0x1bd   : > { %v2616_v13 = vpop.f32.mrf.mxu0 }
 0x1be   : > { %v2617_v19 = vadd.f32 %v2616_v13, %v2615_v22  ;;  %v1580_v45 = vadd.f32 %v1579_v59, %v1483_v0  ;;  %v1637_v34 = vsel %vm1605_vm11, %v1575_v44, %v1621_v43 }
 0x1bf   : > { %v2618_v62 = vpop.f32.mrf.mxu0  ;;  %v1647_v15 = vpack.c.bf16 %v1637_v34, %v1636_v28 }
 0x1c0   : > { %v1486_v17 = vadd.f32 %v2617_v19, %v1389_v7  ;;  %v1622_v12 = vmul.f32 0.2, %v1580_v45  ;;  %vm1606_vm12 = vcmp.gt.f32.partialorder %v1580_v45, 0.0 }
 0x1c1   : > { %v2619_v29 = vpop.f32.mrf.mxu0  ;;  %2746 = vmatmul.mubr.bf16.gmra.mxu1 %v1647_v15 }
 0x1c2   : > { %v2620_v26 = vadd.f32 %v2619_v29, %v2618_v62  ;;  %v1583_v5 = vadd.f32 %v1582_v2, %v1486_v17  ;;  %v1638_v60 = vsel %vm1606_vm12, %v1580_v45, %v1622_v12 }
 0x1c3   : > { %v2621_v40 = vpop.f32.mrf.mxu0 }
 0x1c4   : > { %v1491_v48 = vadd.f32 %v2620_v26, %v3608_v52  ;;  %vm1607_vm13 = vcmp.gt.f32.partialorder %v1583_v5, 0.0  ;;  %v1623_v20 = vmul.f32 0.2, %v1583_v5  ;;  %v3057_v52 = vld [vmem:[#allocation9 + $0x10] sm:$0xff]  }
 0x1c5   : > { %v2622_v25 = vpop.f32.mrf.mxu0  ;;  %2763 = vmatprep.subr.bf16.mxu0 %v3057_v52 }
 0x1c6   : > { %v1588_v31 = vadd.f32 %v2719_v9, %v1491_v48  ;;  %v2623_v56 = vadd.f32 %v2622_v25, %v2621_v40  ;;  %v1639_v58 = vsel %vm1607_vm13, %v1583_v5, %v1623_v20  ;;  %2764 = vmatpush3.bf16.msra.mxu0 %v3057_v52 }
 0x1c7   : > { %v1648_v36 = vpack.c.bf16 %v1639_v58, %v1638_v60  ;;  %2765 = vmatprep.subr.bf16.mxu0 %v3058_v57 }
 0x1c8   : > { %v1494_v3 = vadd.f32 %v2623_v56, %v1397_v24  ;;  %v1624_v50 = vmul.f32 0.2, %v1588_v31  ;;  %vm1608_vm14 = vcmp.gt.f32.partialorder %v1588_v31, 0.0 }
 0x1c9   : > { %2749 = vmatprep.mubr.bf16.mxu1 %v1648_v36 }
 0x1ca   : > { %v1591_v54 = vadd.f32 %v2720_v27, %v1494_v3  ;;  %v1640_v32 = vsel %vm1608_vm14, %v1588_v31, %v1624_v50  ;;  %2766 = vmatpush3.bf16.msra.mxu0 %v3058_v57 }
 0x1cb   : > { %2767 = vmatprep.subr.bf16.mxu0 %v3059_v37 }
 0x1cc   : > { %v1625_v30 = vmul.f32 0.2, %v1591_v54  ;;  %vm1609_vm15 = vcmp.gt.f32.partialorder %v1591_v54, 0.0 }
 0x1ce   : > { %v1641_v35 = vsel %vm1609_vm15, %v1591_v54, %v1625_v30  ;;  %2768 = vmatpush3.bf16.msra.mxu0 %v3059_v37 }
 0x1cf   : > { %v1649_v6 = vpack.c.bf16 %v1641_v35, %v1640_v32 }
 0x1d1   : > { %2750 = vmatmul.mubr.bf16.gmra.mxu1 %v1649_v6 }
 0x261   : > { %v2739_v23 = vpop.f32.mrf.mxu1 }
 0x262   : > { %v1764_v38 = vadd.f32 %v2739_v23, %v3661_v4 }
 0x263   : > { %v1755_v1 = vpop.f32.mrf.mxu1 }
 0x264   : > { %v1756_v9 = vadd.f32 %v3661_v4, %v1755_v1  ;;  %v1836_v10 = vmul.f32 0.2, %v1764_v38  ;;  %vm1820_vm2 = vcmp.gt.f32.partialorder %v1764_v38, 0.0 }
 0x265   : > { %v2740_v41 = vpop.f32.mrf.mxu1 }
 0x266   : > { %v1767_v16 = vadd.f32 %v2740_v41, %v3661_v4  ;;  %v1834_v42 = vmul.f32 0.2, %v1756_v9  ;;  %vm1818_vm1 = vcmp.gt.f32.partialorder %v1756_v9, 0.0  ;;  %v1852_v61 = vsel %vm1820_vm2, %v1764_v38, %v1836_v10 }
 0x267   : > { %v1758_v33 = vpop.f32.mrf.mxu1  ;;  %v3254_v10 = vmov 0  }
 0x268   : > { %vm1821_vm0 = vcmp.gt.f32.partialorder %v1767_v16, 0.0  ;;  %v1837_v46 = vmul.f32 0.2, %v1767_v16  ;;  %v1759_v39 = vadd.f32 %v3661_v4, %v1758_v33  ;;  %v1850_v53 = vsel %vm1818_vm1, %v1756_v9, %v1834_v42  ;;  %2907 = vset.pattern.permute.xlu0 %v3254_v10 }
 0x26a   : > { %vm1819_vm3 = vcmp.gt.f32.partialorder %v1759_v39, 0.0  ;;  %v1835_v14 = vmul.f32 0.2, %v1759_v39  ;;  %v1853_v49 = vsel %vm1821_vm0, %v1767_v16, %v1837_v46  ;;  %vm3253_vm0 = vmmov 0  }
 0x26b   : > { %v1867_v11 = vpack.c.bf16 %v1853_v49, %v1852_v61 }
 0x26c   : > { %v1851_v59 = vsel %vm1819_vm3, %v1759_v39, %v1835_v14  ;;  %v3252_v39 = vmov 0.0  }
 0x26d   : > { %v1866_v63 = vpack.c.bf16 %v1851_v59, %v1850_v53  ;;  %2785 = vmatprep.subr.mxu1 %v3252_v39  ;;  %2817 = vmatprep.mubr.msk.f32.mxu1 %vm3253_vm0, %v3252_v39 }
 0x26f   : > { %2769 = vmatprep.mubr.bf16.mxu0 %v1866_v63 }
 0x270   : > { %2770 = vmatmul.mubr.bf16.vlgmr.msra.gmra.mxu0 %v1867_v11 }
 0x271   : > { %v2743_v18 = vpop.f32.mrf.mxu1 }
 0x272   : > { %v1780_v47 = vadd.f32 %v2743_v18, %v3661_v4 }
 0x273   : > { %v1771_v21 = vpop.f32.mrf.mxu1 }
 0x274   : > { %v1772_v44 = vadd.f32 %v3661_v4, %v1771_v21  ;;  %v1840_v13 = vmul.f32 0.2, %v1780_v47  ;;  %vm1824_vm6 = vcmp.gt.f32.partialorder %v1780_v47, 0.0 }
 0x275   : > { %v2744_v22 = vpop.f32.mrf.mxu1 }
 0x276   : > { %v1783_v27 = vadd.f32 %v2744_v22, %v3661_v4  ;;  %v1838_v0 = vmul.f32 0.2, %v1772_v44  ;;  %vm1822_vm5 = vcmp.gt.f32.partialorder %v1772_v44, 0.0  ;;  %v1856_v2 = vsel %vm1824_vm6, %v1780_v47, %v1840_v13 }
 0x277   : > { %v1774_v43 = vpop.f32.mrf.mxu1 }
 0x278   : > { %vm1825_vm4 = vcmp.gt.f32.partialorder %v1783_v27, 0.0  ;;  %v1841_v7 = vmul.f32 0.2, %v1783_v27  ;;  %v1775_v8 = vadd.f32 %v3661_v4, %v1774_v43  ;;  %v1854_v28 = vsel %vm1822_vm5, %v1772_v44, %v1838_v0  ;;  %v3696_v0 = vld [vmem:[%s3785_s6] ss:$0 sm:$0xff] }
 0x27a   : > { %vm1823_vm7 = vcmp.gt.f32.partialorder %v1775_v8, 0.0  ;;  %v1839_v19 = vmul.f32 0.2, %v1775_v8  ;;  %v1857_v45 = vsel %vm1825_vm4, %v1783_v27, %v1841_v7 }
 0x27b   : > { %v1869_v15 = vpack.c.bf16 %v1857_v45, %v1856_v2 }
 0x27c   : > { %v1855_v34 = vsel %vm1823_vm7, %v1775_v8, %v1839_v19 }
 0x27d   : > { %v1868_v62 = vpack.c.bf16 %v1855_v34, %v1854_v28 }
 0x27f   : > { %2773 = vmatprep.mubr.bf16.mxu0 %v1868_v62 }
 0x280   : > { %2774 = vmatmul.mubr.bf16.gmra.mxu0 %v1869_v15 }
 0x281   : > { %v2747_v17 = vpop.f32.mrf.mxu1 }
 0x282   : > { %v1796_v29 = vadd.f32 %v2747_v17, %v3661_v4 }
 0x283   : > { %v1787_v51 = vpop.f32.mrf.mxu1 }
 0x284   : > { %v1788_v55 = vadd.f32 %v3661_v4, %v1787_v51  ;;  %v1844_v24 = vmul.f32 0.2, %v1796_v29  ;;  %vm1828_vm10 = vcmp.gt.f32.partialorder %v1796_v29, 0.0 }
 0x285   : > { %v2748_v12 = vpop.f32.mrf.mxu1 }
 0x286   : > { %v1799_v26 = vadd.f32 %v2748_v12, %v3661_v4  ;;  %v1842_v40 = vmul.f32 0.2, %v1788_v55  ;;  %vm1826_vm9 = vcmp.gt.f32.partialorder %v1788_v55, 0.0  ;;  %v1860_v36 = vsel %vm1828_vm10, %v1796_v29, %v1844_v24 }
 0x287   : > { %v1790_v5 = vpop.f32.mrf.mxu1 }
 0x288   : > { %vm1829_vm8 = vcmp.gt.f32.partialorder %v1799_v26, 0.0  ;;  %v1845_v48 = vmul.f32 0.2, %v1799_v26  ;;  %v1791_v20 = vadd.f32 %v3661_v4, %v1790_v5  ;;  %v1858_v56 = vsel %vm1826_vm9, %v1788_v55, %v1842_v40 }
 0x28a   : > { %vm1827_vm11 = vcmp.gt.f32.partialorder %v1791_v20, 0.0  ;;  %v1843_v25 = vmul.f32 0.2, %v1791_v20  ;;  %v1861_v31 = vsel %vm1829_vm8, %v1799_v26, %v1845_v48 }
 0x28b   : > { %v1871_v3 = vpack.c.bf16 %v1861_v31, %v1860_v36 }
 0x28c   : > { %v1859_v60 = vsel %vm1827_vm11, %v1791_v20, %v1843_v25 }
 0x28d   : > { %v1870_v58 = vpack.c.bf16 %v1859_v60, %v1858_v56 }
 0x28f   : > { %2777 = vmatprep.mubr.bf16.mxu0 %v1870_v58 }
 0x290   : > { %2778 = vmatmul.mubr.bf16.gmra.mxu0 %v1871_v3 }
 0x291   : > { %v2751_v50 = vpop.f32.mrf.mxu1 }
 0x292   : > { %v1812_v32 = vadd.f32 %v2751_v50, %v3661_v4 }
 0x293   : > { %v1803_v54 = vpop.f32.mrf.mxu1 }
 0x294   : > { %v1804_v30 = vadd.f32 %v3661_v4, %v1803_v54  ;;  %v1848_v1 = vmul.f32 0.2, %v1812_v32  ;;  %vm1832_vm14 = vcmp.gt.f32.partialorder %v1812_v32, 0.0 }
 0x295   : > { %v2752_v35 = vpop.f32.mrf.mxu1 }
 0x296   : > { %v1815_v6 = vadd.f32 %v2752_v35, %v3661_v4  ;;  %v1846_v57 = vmul.f32 0.2, %v1804_v30  ;;  %vm1830_vm13 = vcmp.gt.f32.partialorder %v1804_v30, 0.0  ;;  %v1864_v42 = vsel %vm1832_vm14, %v1812_v32, %v1848_v1 }
 0x297   : > { %v1806_v52 = vpop.f32.mrf.mxu1 }
 0x298   : > { %vm1833_vm12 = vcmp.gt.f32.partialorder %v1815_v6, 0.0  ;;  %v1849_v37 = vmul.f32 0.2, %v1815_v6  ;;  %v1807_v23 = vadd.f32 %v3661_v4, %v1806_v52  ;;  %v1862_v41 = vsel %vm1830_vm13, %v1804_v30, %v1846_v57  ;;  %v2091_v4 = vld [vmem:[#allocation2] sm:$0x1] }
 0x299   : > { %2094 = vperm.xlu0 %2907, %v2091_v4  }
 0x29a   : > { %vm1831_vm15 = vcmp.gt.f32.partialorder %v1807_v23, 0.0  ;;  %v1847_v9 = vmul.f32 0.2, %v1807_v23  ;;  %v1865_v38 = vsel %vm1833_vm12, %v1815_v6, %v1849_v37 }
 0x29b   : > { %v1873_v46 = vpack.c.bf16 %v1865_v38, %v1864_v42 }
 0x29c   : > { %v1863_v16 = vsel %vm1831_vm15, %v1807_v23, %v1847_v9 }
 0x29d   : > { %v1872_v33 = vpack.c.bf16 %v1863_v16, %v1862_v41 }
 0x29f   : > { %2781 = vmatprep.mubr.bf16.mxu0 %v1872_v33 }
 0x2a0   : > { %2782 = vmatmul.mubr.bf16.gmra.mxu0 %v1873_v46 }
 0x330   : > { %v3681_v14 = vpop.f32.mrf.mxu0 }
 0x331   : > { %v1988_v1 = vadd.f32 %v3681_v14, %v3696_v0 }
 0x332   : > { %v3683_v49 = vpop.f32.mrf.mxu0 }
 0x333   : > { %v2060_v41 = vmul.f32 0.2, %v1988_v1  ;;  %vm2044_vm14 = vcmp.gt.f32.partialorder %v1988_v1, 0.0  ;;  %v1980_v42 = vadd.f32 %v3696_v0, %v3683_v49  ;;  %v2097_v49 = vlaneseq }
 0x334   : > { %v3685_v53 = vpop.f32.mrf.mxu0 }
 0x335   : > { %v1991_v57 = vadd.f32 %v3685_v53, %v3696_v0  ;;  %v2076_v4 = vsel %vm2044_vm14, %v1988_v1, %v2060_v41  ;;  %v2058_v10 = vmul.f32 0.2, %v1980_v42  ;;  %vm2042_vm0 = vcmp.gt.f32.partialorder %v1980_v42, 0.0 }
 0x336   : > { %v3687_v59 = vpop.f32.mrf.mxu0 }
 0x337   : > { %v2061_v9 = vmul.f32 0.2, %v1991_v57  ;;  %vm2045_vm13 = vcmp.gt.f32.partialorder %v1991_v57, 0.0  ;;  %v1983_v16 = vadd.f32 %v3696_v0, %v3687_v59  ;;  %v2074_v53 = vsel %vm2042_vm0, %v1980_v42, %v2058_v10  ;;  %v2090_v59 = vld [vmem:[%s3786_s7] sm:$0x1] }
 0x339   : > { %v2077_v33 = vsel %vm2045_vm13, %v1991_v57, %v2061_v9  ;;  %v2059_v46 = vmul.f32 0.2, %v1983_v16  ;;  %vm2043_vm15 = vcmp.gt.f32.partialorder %v1983_v16, 0.0 }
 0x33b   : > { %v2075_v14 = vsel %vm2043_vm15, %v1983_v16, %v2059_v46 }
 0x340   : > { %v2775_v61 = vpop.f32.mrf.mxu0 }
 0x341   : > { %v2004_v36 = vadd.f32 %v2775_v61, %v3696_v0  ;;  %v2098_v61 = vshrl.u32 %v2097_v49, 7 }
 0x342   : > { %v3689_v63 = vpop.f32.mrf.mxu0 }
 0x343   : > { %v2064_v54 = vmul.f32 0.2, %v2004_v36  ;;  %vm2048_vm10 = vcmp.gt.f32.partialorder %v2004_v36, 0.0  ;;  %v1996_v35 = vadd.f32 %v3696_v0, %v3689_v63  ;;  %v2099_v63 = vsub.s32 0, %v2098_v61 }
 0x344   : > { %v2776_v11 = vpop.f32.mrf.mxu0 }
 0x345   : > { %v2007_v56 = vadd.f32 %v2776_v11, %v3696_v0  ;;  %v2080_v52 = vsel %vm2048_vm10, %v2004_v36, %v2064_v54  ;;  %v2062_v37 = vmul.f32 0.2, %v1996_v35  ;;  %vm2046_vm12 = vcmp.gt.f32.partialorder %v1996_v35, 0.0  ;;  %v2095_v11 = vpop.permute.xlu0 %2094 }
 0x346   : > { %v3691_v18 = vpop.f32.mrf.mxu0 }
 0x347   : > { %v2065_v3 = vmul.f32 0.2, %v2007_v56  ;;  %vm2049_vm9 = vcmp.gt.f32.partialorder %v2007_v56, 0.0  ;;  %v1999_v30 = vadd.f32 %v3696_v0, %v3691_v18  ;;  %v2078_v38 = vsel %vm2046_vm12, %v1996_v35, %v2062_v37 }
 0x348   : > { %v2100_v18 = vrot.slane %v2095_v11, %v2099_v63 }
 0x349   : > { %v2081_v32 = vsel %vm2049_vm9, %v2007_v56, %v2065_v3  ;;  %v2063_v6 = vmul.f32 0.2, %v1999_v30  ;;  %vm2047_vm11 = vcmp.gt.f32.partialorder %v1999_v30, 0.0 }
 0x34b   : > { %v2079_v23 = vsel %vm2047_vm11, %v1999_v30, %v2063_v6 }
 0x350   : > { %v2779_v21 = vpop.f32.mrf.mxu0 }
 0x351   : > { %v2020_v12 = vadd.f32 %v2779_v21, %v3696_v0 }
 0x352   : > { %v2011_v44 = vpop.f32.mrf.mxu0 }
 0x353   : > { %v2068_v40 = vmul.f32 0.2, %v2020_v12  ;;  %vm2052_vm6 = vcmp.gt.f32.partialorder %v2020_v12, 0.0  ;;  %v2012_v24 = vadd.f32 %v3696_v0, %v2011_v44 }
 0x354   : > { %v2780_v47 = vpop.f32.mrf.mxu0 }
 0x355   : > { %v2023_v51 = vadd.f32 %v2780_v47, %v3696_v0  ;;  %v2084_v31 = vsel %vm2052_vm6, %v2020_v12, %v2068_v40  ;;  %v2066_v60 = vmul.f32 0.2, %v2012_v24  ;;  %vm2050_vm8 = vcmp.gt.f32.partialorder %v2012_v24, 0.0 }
 0x356   : > { %v2014_v22 = vpop.f32.mrf.mxu0 }
 0x357   : > { %v2069_v26 = vmul.f32 0.2, %v2023_v51  ;;  %vm2053_vm5 = vcmp.gt.f32.partialorder %v2023_v51, 0.0  ;;  %v2015_v48 = vadd.f32 %v3696_v0, %v2014_v22  ;;  %v2082_v50 = vsel %vm2050_vm8, %v2012_v24, %v2066_v60 }
 0x359   : > { %v2085_v20 = vsel %vm2053_vm5, %v2023_v51, %v2069_v26  ;;  %v2067_v25 = vmul.f32 0.2, %v2015_v48  ;;  %vm2051_vm7 = vcmp.gt.f32.partialorder %v2015_v48, 0.0 }
 0x35b   : > { %v2083_v58 = vsel %vm2051_vm7, %v2015_v48, %v2067_v25 }
 0x360   : > { %v2783_v27 = vpop.f32.mrf.mxu0 }
 0x361   : > { %v2036_v8 = vadd.f32 %v2783_v27, %v3696_v0 }
 0x362   : > { %v2027_v43 = vpop.f32.mrf.mxu0 }
 0x363   : > { %v2072_v28 = vmul.f32 0.2, %v2036_v8  ;;  %vm2056_vm2 = vcmp.gt.f32.partialorder %v2036_v8, 0.0  ;;  %v2028_v2 = vadd.f32 %v3696_v0, %v2027_v43 }
 0x364   : > { %v2784_v7 = vpop.f32.mrf.mxu0 }
 0x365   : > { %v2039_v13 = vadd.f32 %v2784_v7, %v3696_v0  ;;  %v2088_v17 = vsel %vm2056_vm2, %v2036_v8, %v2072_v28  ;;  %v2070_v55 = vmul.f32 0.2, %v2028_v2  ;;  %vm2054_vm4 = vcmp.gt.f32.partialorder %v2028_v2, 0.0 }
 0x366   : > { %v2030_v19 = vpop.f32.mrf.mxu0 }
 0x367   : > { %vm2057_vm1 = vcmp.gt.f32.partialorder %v2039_v13, 0.0  ;;  %v2073_v45 = vmul.f32 0.2, %v2039_v13  ;;  %v2031_v34 = vadd.f32 %v3696_v0, %v2030_v19  ;;  %v2086_v5 = vsel %vm2054_vm4, %v2028_v2, %v2070_v55 }
 0x369   : > { %v2089_v62 = vsel %vm2057_vm1, %v2039_v13, %v2073_v45  ;;  %v2071_v15 = vmul.f32 0.2, %v2031_v34  ;;  %vm2055_vm3 = vcmp.gt.f32.partialorder %v2031_v34, 0.0 }
 0x36a   : > { %2786 = vmatpush3.xpose.msra.mxu1 %v2089_v62 }
 0x36b   : > { %2787 = vmatprep.subr.mxu1 %v3252_v39  ;;  %v2087_v29 = vsel %vm2055_vm3, %v2031_v34, %v2071_v15 }
 0x36e   : > { %2788 = vmatpush3.xpose.msra.mxu1 %v2088_v17 }
 0x36f   : > { %2789 = vmatprep.subr.mxu1 %v3252_v39 }
 0x372   : > { %2790 = vmatpush3.xpose.msra.mxu1 %v2087_v29 }
 0x373   : > { %2791 = vmatprep.subr.mxu1 %v3252_v39 }
 0x376   : > { %2792 = vmatpush3.xpose.msra.mxu1 %v2086_v5 }
 0x377   : > { %2793 = vmatprep.subr.mxu1 %v3252_v39 }
 0x37a   : > { %2794 = vmatpush3.xpose.msra.mxu1 %v2085_v20 }
 0x37b   : > { %2795 = vmatprep.subr.mxu1 %v3252_v39 }
 0x37e   : > { %2796 = vmatpush3.xpose.msra.mxu1 %v2084_v31 }
 0x37f   : > { %2797 = vmatprep.subr.mxu1 %v3252_v39 }
 0x382   : > { %2798 = vmatpush3.xpose.msra.mxu1 %v2083_v58 }
 0x383   : > { %2799 = vmatprep.subr.mxu1 %v3252_v39 }
 0x386   : > { %2800 = vmatpush3.xpose.msra.mxu1 %v2082_v50 }
 0x387   : > { %2801 = vmatprep.subr.mxu1 %v3252_v39 }
 0x38a   : > { %2802 = vmatpush3.xpose.msra.mxu1 %v2081_v32 }
 0x38b   : > { %2803 = vmatprep.subr.mxu1 %v3252_v39 }
 0x38e   : > { %2804 = vmatpush3.xpose.msra.mxu1 %v2080_v52 }
 0x38f   : > { %2805 = vmatprep.subr.mxu1 %v3252_v39 }
 0x392   : > { %2806 = vmatpush3.xpose.msra.mxu1 %v2079_v23 }
 0x393   : > { %2807 = vmatprep.subr.mxu1 %v3252_v39 }
 0x396   : > { %2808 = vmatpush3.xpose.msra.mxu1 %v2078_v38 }
 0x397   : > { %2809 = vmatprep.subr.mxu1 %v3252_v39 }
 0x39a   : > { %2810 = vmatpush3.xpose.msra.mxu1 %v2077_v33 }
 0x39b   : > { %2811 = vmatprep.subr.mxu1 %v3252_v39 }
 0x39e   : > { %2812 = vmatpush3.xpose.msra.mxu1 %v2076_v4 }
 0x39f   : > { %2813 = vmatprep.subr.mxu1 %v3252_v39 }
 0x3a2   : > { %2814 = vmatpush3.xpose.msra.mxu1 %v2075_v14 }
 0x3a3   : > { %2815 = vmatprep.subr.mxu1 %v3252_v39 }
 0x3a6   : > { %2816 = vmatpush3.xpose.msra.mxu1 %v2074_v53 }
 0x3a9   : > { %2818 = vmatmul.mubr.f32.vlgmr.msra.gmra.mxu1 %v2090_v59 }
 0x469   : > { %v2167_v21 = vpop.f32.mrf.mxu1 }
 0x46a   : > { %v2168_v44 = vadd.f32 %v2167_v21, %v2100_v18 }
 0x46b   : > { %v2819_v47 = vpop.f32.mrf.mxu1 }
 0x46c   : > { %v2171_v22 = vsub.f32 0.0, %v2168_v44 }
 0x46e   : > { %v2172_v39 = vmul.f32 1.442695, %v2171_v22 }
 0x470   : > { %3060 = vpow2.f32 %v2172_v39 }
 0x47d   : > { %v3061_v27 = vpop.eup %3060 }
 0x47e   : > { %v2174_v43 = vadd.f32 1.0, %v3061_v27 }
 0x480   : > { %3062 = vrcp.f32 %v2174_v43 }
 0x48d   : > { %v3063_v0 = vpop.eup %3062 }
 0x48e   : > { %2176 = vst [vmem:[%s396_s1] sm:$0x1] %v3063_v0 }
 0x48f   : > { %3183 = shalt.err (!%p3180_p9)
}
 0x490   : > { %s3184_s24 = scalar_lea.hbm %s3743_s10, 16  ;;  %s3188_s25 = scalar_lea.hbm %s3788_s9, 64 }
 0x491   : > { %p3185_p1 = scmp.ne.s32.totalorder %s3743_s10, %s3184_s24  ;;  %p3189_p10 = scmp.lt.s32.totalorder %s3743_s10, %s3788_s9 }
 0x492   : > { %p3190_p12 = scmp.lt.s32.totalorder %s3188_s25, %s3184_s24 }
 0x493   : > { %p3186_p8 = pnand %p3185_p1, %p3810_p6 }
 0x494   : > { %p3191_p2 = por %p3190_p12, %p3189_p10 }
 0x495   : > { %p3187_p5 = pneg %p3186_p8 }
 0x497   : > { %p3192_p4 = pnand %p3191_p2, %p3187_p5 }
 0x499   : > { %3195 = shalt.err (!%p3192_p4)
}
 0x49a   : > { %2837 = dma.vmem_to_hbm [thread:$0]  (%p3810_p6), %s2191_s3, 16, %s3743_s10, %s2178_s16  }
 0x49b PF: > { %p2864_p11 = scmp.ge.s32.totalorder %s3242_s14, 2  ;;  %s2202_s1 = sand.u32 1, %s3230_s11  }
 0x49c   : > { %p3811_p13 = scmp.ne.s32.totalorder %s3796_s17, 0  ;;  %s2203_s27 = scalar_lea.sflag [#allocation5], %s2202_s1 }
 0x49e   : > { %p2854_p3 = pnand %p2864_p11, %p3811_p13 }
 0x4a0   : > { %p2855_p0 = pneg %p2854_p3 }
 0x4a2   : > { %3225 = dma.done.wait (%p2855_p0), %s2203_s27, 16  }
 0x4a3   : > { %3227 = vsyncadd (%p2855_p0), %s2203_s27, 4294967280  ;;  %p26_p7 = scmp.ge.s32.totalorder %s3388_s23, 6   ;;  %s3812_s11 = smov %s3234_s12 }
 0x4a4   : > { %s3813_s12 = smov %s3238_s13  ;;  %s3814_s13 = smov %s3398_s29 }
 0x4a5   : > { %s3815_s14 = smov %s3388_s23  ;;  %28 = sbr.rel (!%p26_p7) target bundleno = 10 (0xa), region = 113 }
 0x4aa   :  { %2207 = vsyncpa [#allocation4], 1 }
 0x4ab   :  { %2209 = vsyncpa [#allocation4 + $0x1], 1 }
 0x4ac   :  { %2210 = vsyncpa [#allocation7], 1 }
 0x4ad   :  { %2211 = vsyncpa [#allocation10], 1 }
 0x4ae   :  { %2212 = vsyncpa [#allocation5], 1 }
 0x4af   :  { %2214 = vsyncpa [#allocation5 + $0x1], 1 }

</bundles_post_ra>
